<compile_context>
chip_gen: v7x
topology: tpu7x:2x2x1
jax: 0.10.0
libtpu: 0.0.40
codegen_flags: <defaults>
</compile_context>

<pallas_src>
import jax
import jax.numpy as jnp
from jax.experimental import pallas as pl
from jax.experimental.pallas import tpu as pltpu

LN_EPS = 1e-5  # torch.nn.LayerNorm default


# ---------------------------------------------------------------------------
# math helpers
# ---------------------------------------------------------------------------
def _layernorm(x, gamma, beta):
    mean = jnp.mean(x, axis=-1, keepdims=True)
    var = jnp.mean((x - mean) ** 2, axis=-1, keepdims=True)
    return (x - mean) * jax.lax.rsqrt(var + LN_EPS) * gamma + beta


def _erf_kernel(x):
    # Abramowitz & Stegun 7.1.26 rational approximation (|err| < 1.5e-7).
    # The divide goes to the EUP slot via pl.reciprocal(approx=True).
    p = 0.3275911
    a1, a2, a3, a4, a5 = (0.254829592, -0.284496736, 1.421413741,
                          -1.453152027, 1.061405429)
    sgn = jnp.where(x >= 0.0, 1.0, -1.0)
    ax = jnp.abs(x)
    t = pl.reciprocal(1.0 + p * ax, approx=True)
    poly = ((((a5 * t + a4) * t + a3) * t + a2) * t + a1) * t
    return sgn * (1.0 - poly * jnp.exp(-ax * ax))


def _gelu_exact_kernel(x):
    # matches torch.nn.GELU() (erf-based) well inside the test tolerance
    return 0.5 * x * (1.0 + _erf_kernel(x * 0.7071067811865476))


# ---------------------------------------------------------------------------
# fused ViT kernel: embed (l==0) + encoder layer l + head (l==L-1)
# ---------------------------------------------------------------------------
def _make_vit_kernel(B, N, S, D, NH, HD, HM, L, SP):
    bf16 = jnp.bfloat16

    def kernel(x_ref, pw_ref, pb_ref, cls_ref, pos_ref,
               vecs_ref, wqkv_ref, w1_ref, w2_ref,
               hg_ref, hb_ref, hw_ref, hbias_ref,
               logits_ref, att_ref, act_ref, qkv_ref):
        l = pl.program_id(0)

        # ---- patch embedding: linear proj + cls token + pos embedding ------
        @pl.when(l == 0)
        def _embed():
            # one (B*N, P) x (P, D) matmul for the whole batch
            proj = jnp.dot(x_ref[...], pw_ref[...],
                           preferred_element_type=jnp.float32) + pb_ref[...]
            for b in range(B):                            # B tiny: static unroll
                act_ref[b * S:b * S + 1, :] = cls_ref[...] + pos_ref[0:1, :]
                act_ref[b * S + 1:(b + 1) * S, :] = (
                    proj[b * N:(b + 1) * N, :] + pos_ref[1:S, :])

        # ---- per-layer packed small vectors (single DMA'd block) -----------
        ln1g = vecs_ref[0, :, 0:D]
        ln1b = vecs_ref[0, :, D:2 * D]
        bqkv = vecs_ref[0, :, 2 * D:5 * D]
        ln2g = vecs_ref[0, :, 5 * D:6 * D]
        ln2b = vecs_ref[0, :, 6 * D:7 * D]
        b1 = vecs_ref[0, :, 7 * D:7 * D + HM]
        b2 = vecs_ref[0, :, 7 * D + HM:8 * D + HM]
        wqkv = wqkv_ref[0]                                # (D, 3D) bf16
        w1 = w1_ref[0]                                    # (D, HM) bf16
        w2 = w2_ref[0]                                    # (HM, D) bf16

        # ---- attention: fused QKV matmul on the whole (B*S, D) slab --------
        x = act_ref[...]                                  # (B*S, D) f32
        z = _layernorm(x, ln1g, ln1b)
        qkv_ref[...] = (jnp.dot(z.astype(bf16), wqkv,
                                preferred_element_type=jnp.float32)
                        + bqkv).astype(bf16)              # (B*S, 3D) bf16

        pad_tail = jnp.zeros((S, SP - S), bf16)           # lane-dense att rows
        # B and NH are tiny here -> static unroll.  At realistic NH switch to
        # lax.fori_loop with pl.ds(h*HD, HD) + pl.multiple_of.
        for b in range(B):
            r0 = b * S
            for h in range(NH):
                # 1/sqrt(HD) is pre-folded into Wq/bq, so no divide here.
                q_h = qkv_ref[r0:r0 + S, h * HD:(h + 1) * HD]          # bf16
                k_h = qkv_ref[r0:r0 + S, D + h * HD:D + (h + 1) * HD]
                v_h = qkv_ref[r0:r0 + S, 2 * D + h * HD:2 * D + (h + 1) * HD]

                s = jax.lax.dot_general(
                    q_h, k_h, (((1,), (1,)), ((), ())),
                    preferred_element_type=jnp.float32)                # (S, S)
                s = s - jnp.max(s, axis=-1, keepdims=True)
                e = jnp.exp(s)
                att = e * pl.reciprocal(jnp.sum(e, axis=-1, keepdims=True),
                                        approx=True)
                att_bf = att.astype(bf16)
                att_ref[0, b, h] = jnp.concatenate([att_bf, pad_tail], axis=-1)

                pv = jnp.dot(att_bf, v_h, preferred_element_type=jnp.float32)
                # residual-1 accumulated directly into the activation slab
                act_ref[r0:r0 + S, h * HD:(h + 1) * HD] += pv

        # ---- MLP on the whole (B*S, D) slab --------------------------------
        x2 = act_ref[...]                                 # x + ctx
        z2 = _layernorm(x2, ln2g, ln2b)
        hid = _gelu_exact_kernel(
            jnp.dot(z2.astype(bf16), w1, preferred_element_type=jnp.float32)
            + b1)
        mlp = jnp.dot(hid.astype(bf16), w2,
                      preferred_element_type=jnp.float32) + b2
        act_ref[...] = x2 + mlp                           # residual 2

        # ---- classification head on the cls tokens -------------------------
        @pl.when(l == L - 1)
        def _head():
            cls_rows = jnp.concatenate(
                [act_ref[b * S:b * S + 1, :] for b in range(B)], axis=0)  # (B,D)
            zc = _layernorm(cls_rows, hg_ref[...], hb_ref[...])
            logits_ref[...] = (jnp.dot(zc.astype(bf16), hw_ref[...],
                                       preferred_element_type=jnp.float32)
                               + hbias_ref[...])

    return kernel


# ---------------------------------------------------------------------------
# parameter init (deterministic, torch-style (out, in) weight shapes)
# ---------------------------------------------------------------------------
def init_params(key, P, N, D, NH, HM, L, C):
    S = N + 1

    def dense(k, out_dim, in_dim):
        kw, kb = jax.random.split(k)
        w = jax.random.normal(kw, (out_dim, in_dim), jnp.float32) / jnp.sqrt(
            jnp.float32(in_dim))
        b = jax.random.normal(kb, (out_dim,), jnp.float32) * 0.02
        return w, b

    keys = jax.random.split(key, 4 + L)
    proj_w, proj_b = dense(keys[0], D, P)
    cls = jax.random.normal(keys[1], (1, D), jnp.float32)
    pos = jax.random.normal(keys[2], (1, S, D), jnp.float32)

    layers = []
    for i in range(L):
        lk = jax.random.split(keys[4 + i], 5)
        wq, bq = dense(lk[0], D, D)
        wk, bk = dense(lk[1], D, D)
        wv, bv = dense(lk[2], D, D)
        w1, b1 = dense(lk[3], HM, D)
        w2, b2 = dense(lk[4], D, HM)
        layers.append(dict(
            ln1_g=jnp.ones((D,), jnp.float32), ln1_b=jnp.zeros((D,), jnp.float32),
            wq=wq, bq=bq, wk=wk, bk=bk, wv=wv, bv=bv,
            ln2_g=jnp.ones((D,), jnp.float32), ln2_b=jnp.zeros((D,), jnp.float32),
            w1=w1, b1=b1, w2=w2, b2=b2))

    head_w, head_b = dense(keys[3], C, D)
    return dict(proj_w=proj_w, proj_b=proj_b, cls=cls, pos=pos, layers=layers,
                head_ln_g=jnp.ones((D,), jnp.float32),
                head_ln_b=jnp.zeros((D,), jnp.float32),
                head_w=head_w, head_b=head_b)


# ---------------------------------------------------------------------------
# generation-aware VMEM limit (v7x has only 64 MiB per TensorCore)
# ---------------------------------------------------------------------------
def _pick_vmem_limit():
    try:
        info = pltpu.get_tpu_info()
        cap = getattr(info, "vmem_capacity_bytes", None)
    except Exception:
        cap = None
    if not cap:
        return None  # fall back to the compiler default
    # ~75% of per-core VMEM (≈48 MiB on v7x, ≈96 MiB on v5e/v6e), capped.
    return int(min(cap * 3 // 4, 100 * 1024 * 1024))


# ---------------------------------------------------------------------------
# full forward (Pallas): one pallas_call, grid over layers
# ---------------------------------------------------------------------------
def vit_forward_pallas(x, params, num_heads):
    B, N, P = x.shape
    D = params["proj_w"].shape[0]
    S = N + 1
    NH = num_heads
    HD = D // NH
    HM = params["layers"][0]["w1"].shape[0]
    C = params["head_w"].shape[0]
    L = len(params["layers"])
    SP = ((S + 127) // 128) * 128          # lane-dense attention output width
    TOT = 8 * D + HM                       # packed per-layer vector length
    TOTP = ((TOT + 127) // 128) * 128
    scale = float(HD) ** 0.5
    wdt = jnp.bfloat16                     # matmul-operand dtype (f32 accumulation)

    # ---- stack per-layer weights along a leading L axis (the grid axis) ----
    def stack(f):
        return jnp.stack([f(lp) for lp in params["layers"]], axis=0)

    # fused QKV weight (D, 3D); 1/sqrt(HD) folded into the Q columns / bias.
    wqkv = stack(lambda lp: jnp.concatenate(
        [(lp["wq"] / scale).T, lp["wk"].T, lp["wv"].T], axis=1)).astype(wdt)
    w1 = stack(lambda lp: lp["w1"].T).astype(wdt)        # (L, D, HM)
    w2 = stack(lambda lp: lp["w2"].T).astype(wdt)        # (L, HM, D)

    # all per-layer small vectors packed into one block -> one DMA per step
    def pack_vecs(lp):
        v = jnp.concatenate([lp["ln1_g"], lp["ln1_b"],
                             lp["bq"] / scale, lp["bk"], lp["bv"],
                             lp["ln2_g"], lp["ln2_b"],
                             lp["b1"], lp["b2"]], axis=0)
        return jnp.pad(v, (0, TOTP - TOT)).reshape(1, TOTP)
    vecs = stack(pack_vecs)                              # (L, 1, TOTP) f32

    kernel = _make_vit_kernel(B, N, S, D, NH, HD, HM, L, SP)

    per_layer_3d = lambda l: (l, 0, 0)
    const_2d = lambda l: (0, 0)

    logits, att_pad = pl.pallas_call(
        kernel,
        out_shape=(jax.ShapeDtypeStruct((B, C), jnp.float32),
                   jax.ShapeDtypeStruct((L, B, NH, S, SP), jnp.bfloat16)),
        grid=(L,),
        in_specs=[
            pl.BlockSpec((B * N, P), const_2d),          # patches, bf16
            pl.BlockSpec((P, D), const_2d),              # proj W (bf16)
            pl.BlockSpec((1, D), const_2d),              # proj b
            pl.BlockSpec((1, D), const_2d),              # cls token
            pl.BlockSpec((S, D), const_2d),              # pos embedding
            pl.BlockSpec((1, 1, TOTP), per_layer_3d),    # packed layer vectors
            pl.BlockSpec((1, D, 3 * D), per_layer_3d),   # fused Wqkv (bf16)
            pl.BlockSpec((1, D, HM), per_layer_3d),      # mlp W1 (bf16)
            pl.BlockSpec((1, HM, D), per_layer_3d),      # mlp W2 (bf16)
            pl.BlockSpec((1, D), const_2d),              # head ln gamma
            pl.BlockSpec((1, D), const_2d),              # head ln beta
            pl.BlockSpec((D, C), const_2d),              # head W (bf16)
            pl.BlockSpec((1, C), const_2d),              # head b
        ],
        out_specs=(
            # logits: constant block index -> VMEM-resident, written at l==L-1
            pl.BlockSpec((B, C), const_2d),
            # attention maps: bf16, lane-padded, one block streamed per layer
            pl.BlockSpec((1, B, NH, S, SP), lambda l: (l, 0, 0, 0, 0)),
        ),
        scratch_shapes=[
            pltpu.VMEM((B * S, D), jnp.float32),         # activations (resident)
            pltpu.VMEM((B * S, 3 * D), jnp.bfloat16),    # staged QKV
        ],
        compiler_params=pltpu.CompilerParams(
            # L carries the activation state -> sequential ("arbitrary").
            dimension_semantics=("arbitrary",),
            vmem_limit_bytes=_pick_vmem_limit(),
        ),
    )(
        x.reshape(B * N, P).astype(wdt),
        params["proj_w"].T.astype(wdt), params["proj_b"].reshape(1, D),
        params["cls"], params["pos"].reshape(S, D),
        vecs, wqkv, w1, w2,
        params["head_ln_g"].reshape(1, D), params["head_ln_b"].reshape(1, D),
        params["head_w"].T.astype(wdt), params["head_b"].reshape(1, C),
    )

    att = att_pad[..., :S].astype(jnp.float32)           # drop lane padding
    return logits, [att[i] for i in range(L)]


# ---------------------------------------------------------------------------
# pure-jnp reference mirroring the torch forward (f32, for the sanity check)
# ---------------------------------------------------------------------------
def vit_reference(x, params, num_heads):
    B, N, P = x.shape
    D = params["proj_w"].shape[0]
    HD = D // num_heads
    emb = x @ params["proj_w"].T + params["proj_b"]
    cls = jnp.broadcast_to(params["cls"], (B, 1, D))
    h = jnp.concatenate([cls, emb], axis=1) + params["pos"]
    att_list = []
    for lp in params["layers"]:
        S = h.shape[1]
        z = _layernorm(h, lp["ln1_g"], lp["ln1_b"])
        q = z @ lp["wq"].T + lp["bq"]
        k = z @ lp["wk"].T + lp["bk"]
        v = z @ lp["wv"].T + lp["bv"]
        q = q.reshape(B, S, num_heads, HD).transpose(0, 2, 1, 3)
        k = k.reshape(B, S, num_heads, HD).transpose(0, 2, 3, 1)
        v = v.reshape(B, S, num_heads, HD).transpose(0, 2, 1, 3)
        att = jax.nn.softmax((q @ k) / jnp.sqrt(jnp.float32(HD)), axis=-1)
        ctx = (att @ v).transpose(0, 2, 1, 3).reshape(B, S, D)
        h = h + ctx
        z = _layernorm(h, lp["ln2_g"], lp["ln2_b"])
        m = jax.nn.gelu(z @ lp["w1"].T + lp["b1"], approximate=False)
        h = h + (m @ lp["w2"].T + lp["b2"])
        att_list.append(att)
    z = _layernorm(h[:, 0], params["head_ln_g"], params["head_ln_b"])
    logits = z @ params["head_w"].T + params["head_b"]
    return logits, att_list


# ---------------------------------------------------------------------------
if __name__ == "__main__":
    # small shapes consistent with the module's forward
    B, N, P = 2, 8, 48          # batch, num_patches, patch_vec_size
    D, NH, HM = 32, 4, 64       # latent_vec_dim, num_heads, mlp_hidden_dim
    L, C = 2, 10                # num_layers, num_classes

    key = jax.random.PRNGKey(0)
    kx, kp = jax.random.split(key)
    x = jax.random.normal(kx, (B, N, P), dtype=jnp.float32)
    params = init_params(kp, P, N, D, NH, HM, L, C)

    logits, atts = vit_forward_pallas(x, params, NH)
    logits = jax.block_until_ready(logits)
    atts = jax.block_until_ready(atts)

    ref_logits, ref_atts = vit_reference(x, params, NH)
    assert logits.shape == (B, C)
    assert all(a.shape == (B, NH, N + 1, N + 1) for a in atts)

    # tolerances sized for bf16 matmul operands (f32 accumulation) across all
    # projection/MLP AND attention-score/PV matmuls + bf16 attention storage,
    # compounded over L layers vs the f32 reference.
    ATT_TOL = 3e-2
    LOGIT_TOL = 4e-2
    assert jnp.allclose(logits, ref_logits, atol=LOGIT_TOL, rtol=LOGIT_TOL), \
        "logits mismatch"
    for a, ra in zip(atts, ref_atts):
        assert jnp.allclose(a, ra, atol=ATT_TOL, rtol=ATT_TOL), \
            "attention mismatch"

    print("KERNEL_OK")
</pallas_src>

<mosaic_0001>
module attributes {stable_mosaic.version = 11 : i64} {
  func.func @kernel(%arg0: i32, %arg1: memref<16x48xbf16, #tpu.memory_space<vmem>>, %arg2: memref<48x32xbf16, #tpu.memory_space<vmem>>, %arg3: memref<1x32xf32, #tpu.memory_space<vmem>>, %arg4: memref<1x32xf32, #tpu.memory_space<vmem>>, %arg5: memref<9x32xf32, #tpu.memory_space<vmem>>, %arg6: memref<1x1x384xf32, #tpu.memory_space<vmem>>, %arg7: memref<1x32x96xbf16, #tpu.memory_space<vmem>>, %arg8: memref<1x32x64xbf16, #tpu.memory_space<vmem>>, %arg9: memref<1x64x32xbf16, #tpu.memory_space<vmem>>, %arg10: memref<1x32xf32, #tpu.memory_space<vmem>>, %arg11: memref<1x32xf32, #tpu.memory_space<vmem>>, %arg12: memref<32x10xbf16, #tpu.memory_space<vmem>>, %arg13: memref<1x10xf32, #tpu.memory_space<vmem>>, %arg14: memref<2x10xf32, #tpu.memory_space<vmem>>, %arg15: memref<1x2x4x9x128xbf16, #tpu.memory_space<vmem>>, %arg16: memref<18x32xf32, #tpu.memory_space<vmem>>, %arg17: memref<18x96xbf16, #tpu.memory_space<vmem>>) attributes {dimension_semantics = [#tpu.dimension_semantics<arbitrary>], iteration_bounds = array<i64: 2>, scalar_prefetch = 0 : i64, scratch_operands = 2 : i64, tpu.core_type = #tpu.core_type<tc>, window_params = [{pipeline_mode = #tpu.pipeline_mode<synchronous>, transform_indices = @transform_0, window_bounds = array<i64: 16, 48>}, {pipeline_mode = #tpu.pipeline_mode<synchronous>, transform_indices = @transform_1, window_bounds = array<i64: 48, 32>}, {pipeline_mode = #tpu.pipeline_mode<synchronous>, transform_indices = @transform_2, window_bounds = array<i64: 1, 32>}, {pipeline_mode = #tpu.pipeline_mode<synchronous>, transform_indices = @transform_3, window_bounds = array<i64: 1, 32>}, {pipeline_mode = #tpu.pipeline_mode<synchronous>, transform_indices = @transform_4, window_bounds = array<i64: 9, 32>}, {transform_indices = @transform_5, window_bounds = array<i64: 1, 1, 384>}, {transform_indices = @transform_6, window_bounds = array<i64: 1, 32, 96>}, {transform_indices = @transform_7, window_bounds = array<i64: 1, 32, 64>}, {transform_indices = @transform_8, window_bounds = array<i64: 1, 64, 32>}, {pipeline_mode = #tpu.pipeline_mode<synchronous>, transform_indices = @transform_9, window_bounds = array<i64: 1, 32>}, {pipeline_mode = #tpu.pipeline_mode<synchronous>, transform_indices = @transform_10, window_bounds = array<i64: 1, 32>}, {pipeline_mode = #tpu.pipeline_mode<synchronous>, transform_indices = @transform_11, window_bounds = array<i64: 32, 10>}, {pipeline_mode = #tpu.pipeline_mode<synchronous>, transform_indices = @transform_12, window_bounds = array<i64: 1, 10>}, {pipeline_mode = #tpu.pipeline_mode<synchronous>, transform_indices = @transform_13, window_bounds = array<i64: 2, 10>}, {transform_indices = @transform_14, window_bounds = array<i64: 1, 2, 4, 9, 128>}]} {
    %c0_i32 = arith.constant 0 : i32
    %0 = arith.cmpi eq, %arg0, %c0_i32 : i32
    %1 = arith.extui %0 : i1 to i32
    %c0_i32_0 = arith.constant 0 : i32
    %2 = arith.cmpi ne, %1, %c0_i32_0 : i32
    scf.if %2 {
      %c0_200 = arith.constant 0 : index
      %c0_201 = arith.constant 0 : index
      %313 = vector.load %arg1[%c0_200, %c0_201] : memref<16x48xbf16, #tpu.memory_space<vmem>>, vector<16x48xbf16>
      %c0_202 = arith.constant 0 : index
      %c0_203 = arith.constant 0 : index
      %314 = vector.load %arg2[%c0_202, %c0_203] : memref<48x32xbf16, #tpu.memory_space<vmem>>, vector<48x32xbf16>
      %cst_204 = arith.constant dense<0.000000e+00> : vector<16x32xf32>
      %315 = tpu.matmul %313, %314, %cst_204 {dimension_numbers = #tpu.dot_dimension_numbers<[1], [0], [0], [1], [0, 0, 1, 1], [], []>} : vector<16x48xbf16>, vector<48x32xbf16>, vector<16x32xf32> -> vector<16x32xf32>
      %c0_205 = arith.constant 0 : index
      %c0_206 = arith.constant 0 : index
      %316 = vector.load %arg3[%c0_205, %c0_206] : memref<1x32xf32, #tpu.memory_space<vmem>>, vector<1x32xf32>
      %317 = vector.broadcast %316 : vector<1x32xf32> to vector<16x32xf32>
      %318 = arith.addf %315, %317 : vector<16x32xf32>
      %c0_207 = arith.constant 0 : index
      %c0_208 = arith.constant 0 : index
      %319 = vector.load %arg4[%c0_207, %c0_208] : memref<1x32xf32, #tpu.memory_space<vmem>>, vector<1x32xf32>
      %c0_209 = arith.constant 0 : index
      %c0_210 = arith.constant 0 : index
      %320 = vector.load %arg5[%c0_209, %c0_210] : memref<9x32xf32, #tpu.memory_space<vmem>>, vector<1x32xf32>
      %321 = arith.addf %319, %320 : vector<1x32xf32>
      %c0_211 = arith.constant 0 : index
      %c0_212 = arith.constant 0 : index
      %322 = vector.load %arg16[%c0_211, %c0_212] : memref<18x32xf32, #tpu.memory_space<vmem>>, vector<1x32xf32>
      tpu.vector_store %arg16[%c0_211, %c0_212], %321 {strides = array<i32>} : memref<18x32xf32, #tpu.memory_space<vmem>>, vector<1x32xf32>,
      %323 = vector.extract_strided_slice %318 {offsets = [0, 0], sizes = [8, 32], strides = [1, 1]} : vector<16x32xf32> to vector<8x32xf32>
      %c1_213 = arith.constant 1 : index
      %c0_214 = arith.constant 0 : index
      %324 = vector.load %arg5[%c1_213, %c0_214] : memref<9x32xf32, #tpu.memory_space<vmem>>, vector<8x32xf32>
      %325 = arith.addf %323, %324 : vector<8x32xf32>
      %c1_215 = arith.constant 1 : index
      %c0_216 = arith.constant 0 : index
      %326 = vector.load %arg16[%c1_215, %c0_216] : memref<18x32xf32, #tpu.memory_space<vmem>>, vector<8x32xf32>
      tpu.vector_store %arg16[%c1_215, %c0_216], %325 {strides = array<i32>} : memref<18x32xf32, #tpu.memory_space<vmem>>, vector<8x32xf32>,
      %c0_217 = arith.constant 0 : index
      %c0_218 = arith.constant 0 : index
      %327 = vector.load %arg4[%c0_217, %c0_218] : memref<1x32xf32, #tpu.memory_space<vmem>>, vector<1x32xf32>
      %c0_219 = arith.constant 0 : index
      %c0_220 = arith.constant 0 : index
      %328 = vector.load %arg5[%c0_219, %c0_220] : memref<9x32xf32, #tpu.memory_space<vmem>>, vector<1x32xf32>
      %329 = arith.addf %327, %328 : vector<1x32xf32>
      %c9_221 = arith.constant 9 : index
      %c0_222 = arith.constant 0 : index
      %330 = vector.load %arg16[%c9_221, %c0_222] : memref<18x32xf32, #tpu.memory_space<vmem>>, vector<1x32xf32>
      tpu.vector_store %arg16[%c9_221, %c0_222], %329 {strides = array<i32>} : memref<18x32xf32, #tpu.memory_space<vmem>>, vector<1x32xf32>,
      %331 = vector.extract_strided_slice %318 {offsets = [8, 0], sizes = [8, 32], strides = [1, 1]} : vector<16x32xf32> to vector<8x32xf32>
      %c1_223 = arith.constant 1 : index
      %c0_224 = arith.constant 0 : index
      %332 = vector.load %arg5[%c1_223, %c0_224] : memref<9x32xf32, #tpu.memory_space<vmem>>, vector<8x32xf32>
      %333 = arith.addf %331, %332 : vector<8x32xf32>
      %c10 = arith.constant 10 : index
      %c0_225 = arith.constant 0 : index
      %334 = vector.load %arg16[%c10, %c0_225] : memref<18x32xf32, #tpu.memory_space<vmem>>, vector<8x32xf32>
      tpu.vector_store %arg16[%c10, %c0_225], %333 {strides = array<i32>} : memref<18x32xf32, #tpu.memory_space<vmem>>, vector<8x32xf32>,
    } else {
    }
    %c0 = arith.constant 0 : index
    %c0_1 = arith.constant 0 : index
    %c0_2 = arith.constant 0 : index
    %3 = vector.load %arg6[%c0, %c0_1, %c0_2] : memref<1x1x384xf32, #tpu.memory_space<vmem>>, vector<1x1x32xf32>
    %4 = vector.shape_cast %3 : vector<1x1x32xf32> to vector<1x32xf32>
    %c0_3 = arith.constant 0 : index
    %c0_4 = arith.constant 0 : index
    %c32 = arith.constant 32 : index
    %5 = vector.load %arg6[%c0_3, %c0_4, %c32] : memref<1x1x384xf32, #tpu.memory_space<vmem>>, vector<1x1x32xf32>
    %6 = vector.shape_cast %5 : vector<1x1x32xf32> to vector<1x32xf32>
    %c0_5 = arith.constant 0 : index
    %c0_6 = arith.constant 0 : index
    %c64 = arith.constant 64 : index
    %7 = vector.load %arg6[%c0_5, %c0_6, %c64] : memref<1x1x384xf32, #tpu.memory_space<vmem>>, vector<1x1x96xf32>
    %8 = vector.shape_cast %7 : vector<1x1x96xf32> to vector<1x96xf32>
    %c0_7 = arith.constant 0 : index
    %c0_8 = arith.constant 0 : index
    %c160 = arith.constant 160 : index
    %9 = vector.load %arg6[%c0_7, %c0_8, %c160] : memref<1x1x384xf32, #tpu.memory_space<vmem>>, vector<1x1x32xf32>
    %10 = vector.shape_cast %9 : vector<1x1x32xf32> to vector<1x32xf32>
    %c0_9 = arith.constant 0 : index
    %c0_10 = arith.constant 0 : index
    %c192 = arith.constant 192 : index
    %11 = vector.load %arg6[%c0_9, %c0_10, %c192] : memref<1x1x384xf32, #tpu.memory_space<vmem>>, vector<1x1x32xf32>
    %12 = vector.shape_cast %11 : vector<1x1x32xf32> to vector<1x32xf32>
    %c0_11 = arith.constant 0 : index
    %c0_12 = arith.constant 0 : index
    %c224 = arith.constant 224 : index
    %13 = vector.load %arg6[%c0_11, %c0_12, %c224] : memref<1x1x384xf32, #tpu.memory_space<vmem>>, vector<1x1x64xf32>
    %14 = vector.shape_cast %13 : vector<1x1x64xf32> to vector<1x64xf32>
    %c0_13 = arith.constant 0 : index
    %c0_14 = arith.constant 0 : index
    %c288 = arith.constant 288 : index
    %15 = vector.load %arg6[%c0_13, %c0_14, %c288] : memref<1x1x384xf32, #tpu.memory_space<vmem>>, vector<1x1x32xf32>
    %16 = vector.shape_cast %15 : vector<1x1x32xf32> to vector<1x32xf32>
    %c0_15 = arith.constant 0 : index
    %c0_16 = arith.constant 0 : index
    %c0_17 = arith.constant 0 : index
    %17 = vector.load %arg7[%c0_15, %c0_16, %c0_17] : memref<1x32x96xbf16, #tpu.memory_space<vmem>>, vector<1x32x96xbf16>
    %18 = vector.shape_cast %17 : vector<1x32x96xbf16> to vector<32x96xbf16>
    %c0_18 = arith.constant 0 : index
    %c0_19 = arith.constant 0 : index
    %c0_20 = arith.constant 0 : index
    %19 = vector.load %arg8[%c0_18, %c0_19, %c0_20] : memref<1x32x64xbf16, #tpu.memory_space<vmem>>, vector<1x32x64xbf16>
    %20 = vector.shape_cast %19 : vector<1x32x64xbf16> to vector<32x64xbf16>
    %c0_21 = arith.constant 0 : index
    %c0_22 = arith.constant 0 : index
    %c0_23 = arith.constant 0 : index
    %21 = vector.load %arg9[%c0_21, %c0_22, %c0_23] : memref<1x64x32xbf16, #tpu.memory_space<vmem>>, vector<1x64x32xbf16>
    %22 = vector.shape_cast %21 : vector<1x64x32xbf16> to vector<64x32xbf16>
    %c0_24 = arith.constant 0 : index
    %c0_25 = arith.constant 0 : index
    %23 = vector.load %arg16[%c0_24, %c0_25] : memref<18x32xf32, #tpu.memory_space<vmem>>, vector<18x32xf32>
    %cst = arith.constant dense<0.000000e+00> : vector<18xf32>
    %24 = vector.multi_reduction <add>, %23, %cst [1] : vector<18x32xf32> to vector<18xf32>
    %25 = vector.shape_cast %24 : vector<18xf32> to vector<18x1xf32>
    %cst_26 = arith.constant 3.200000e+01 : f32
    %26 = vector.broadcast %cst_26 : f32 to vector<18x1xf32>
    %27 = arith.divf %25, %26 : vector<18x1xf32>
    %28 = vector.broadcast %27 : vector<18x1xf32> to vector<18x32xf32>
    %29 = arith.subf %23, %28 : vector<18x32xf32>
    %30 = arith.mulf %29, %29 : vector<18x32xf32>
    %cst_27 = arith.constant dense<0.000000e+00> : vector<18xf32>
    %31 = vector.multi_reduction <add>, %30, %cst_27 [1] : vector<18x32xf32> to vector<18xf32>
    %32 = vector.shape_cast %31 : vector<18xf32> to vector<18x1xf32>
    %cst_28 = arith.constant 3.200000e+01 : f32
    %33 = vector.broadcast %cst_28 : f32 to vector<18x1xf32>
    %34 = arith.divf %32, %33 : vector<18x1xf32>
    %35 = vector.broadcast %27 : vector<18x1xf32> to vector<18x32xf32>
    %36 = arith.subf %23, %35 : vector<18x32xf32>
    %cst_29 = arith.constant 9.99999974E-6 : f32
    %37 = vector.broadcast %cst_29 : f32 to vector<18x1xf32>
    %38 = arith.addf %34, %37 : vector<18x1xf32>
    %39 = math.rsqrt %38 : vector<18x1xf32>
    %40 = vector.broadcast %39 : vector<18x1xf32> to vector<18x32xf32>
    %41 = arith.mulf %36, %40 : vector<18x32xf32>
    %42 = vector.broadcast %4 : vector<1x32xf32> to vector<18x32xf32>
    %43 = arith.mulf %41, %42 : vector<18x32xf32>
    %44 = vector.broadcast %6 : vector<1x32xf32> to vector<18x32xf32>
    %45 = arith.addf %43, %44 : vector<18x32xf32>
    %46 = arith.truncf %45 : vector<18x32xf32> to vector<18x32xbf16>
    %cst_30 = arith.constant dense<0.000000e+00> : vector<18x96xf32>
    %47 = tpu.matmul %46, %18, %cst_30 {dimension_numbers = #tpu.dot_dimension_numbers<[1], [0], [0], [1], [0, 0, 1, 1], [], []>} : vector<18x32xbf16>, vector<32x96xbf16>, vector<18x96xf32> -> vector<18x96xf32>
    %48 = vector.broadcast %8 : vector<1x96xf32> to vector<18x96xf32>
    %49 = arith.addf %47, %48 : vector<18x96xf32>
    %50 = arith.truncf %49 : vector<18x96xf32> to vector<18x96xbf16>
    %c0_31 = arith.constant 0 : index
    %c0_32 = arith.constant 0 : index
    %51 = vector.load %arg17[%c0_31, %c0_32] : memref<18x96xbf16, #tpu.memory_space<vmem>>, vector<18x96xbf16>
    tpu.vector_store %arg17[%c0_31, %c0_32], %50 {strides = array<i32>} : memref<18x96xbf16, #tpu.memory_space<vmem>>, vector<18x96xbf16>,
    %cst_33 = arith.constant 0.000000e+00 : bf16
    %52 = vector.broadcast %cst_33 : bf16 to vector<9x119xbf16>
    %c0_34 = arith.constant 0 : index
    %c0_35 = arith.constant 0 : index
    %53 = vector.load %arg17[%c0_34, %c0_35] : memref<18x96xbf16, #tpu.memory_space<vmem>>, vector<9x8xbf16>
    %c0_36 = arith.constant 0 : index
    %c32_37 = arith.constant 32 : index
    %54 = vector.load %arg17[%c0_36, %c32_37] : memref<18x96xbf16, #tpu.memory_space<vmem>>, vector<9x8xbf16>
    %c0_38 = arith.constant 0 : index
    %c64_39 = arith.constant 64 : index
    %55 = vector.load %arg17[%c0_38, %c64_39] : memref<18x96xbf16, #tpu.memory_space<vmem>>, vector<9x8xbf16>
    %cst_40 = arith.constant dense<0.000000e+00> : vector<9x9xf32>
    %56 = tpu.matmul %53, %54, %cst_40 {dimension_numbers = #tpu.dot_dimension_numbers<[1], [1], [0], [0], [0, 0, 1, 0], [], []>} : vector<9x8xbf16>, vector<9x8xbf16>, vector<9x9xf32> -> vector<9x9xf32>
    %cst_41 = arith.constant dense<0xFF800000> : vector<9xf32>
    %57 = vector.multi_reduction <maximumf>, %56, %cst_41 [1] : vector<9x9xf32> to vector<9xf32>
    %58 = vector.shape_cast %57 : vector<9xf32> to vector<9x1xf32>
    %59 = vector.broadcast %58 : vector<9x1xf32> to vector<9x9xf32>
    %60 = arith.subf %56, %59 : vector<9x9xf32>
    %61 = math.exp %60 : vector<9x9xf32>
    %cst_42 = arith.constant dense<0.000000e+00> : vector<9xf32>
    %62 = vector.multi_reduction <add>, %61, %cst_42 [1] : vector<9x9xf32> to vector<9xf32>
    %63 = vector.shape_cast %62 : vector<9xf32> to vector<9x1xf32>
    %64 = tpu.reciprocal %63 {approx = true} : vector<9x1xf32> -> vector<9x1xf32>
    %65 = vector.broadcast %64 : vector<9x1xf32> to vector<9x9xf32>
    %66 = arith.mulf %61, %65 : vector<9x9xf32>
    %67 = arith.truncf %66 : vector<9x9xf32> to vector<9x9xbf16>
    %68 = tpu.concatenate %67, %52 in 1 : vector<9x9xbf16>, vector<9x119xbf16> -> vector<9x128xbf16>
    %c0_43 = arith.constant 0 : index
    %c0_44 = arith.constant 0 : index
    %c0_45 = arith.constant 0 : index
    %c0_46 = arith.constant 0 : index
    %c0_47 = arith.constant 0 : index
    %69 = vector.load %arg15[%c0_43, %c0_44, %c0_45, %c0_46, %c0_47] : memref<1x2x4x9x128xbf16, #tpu.memory_space<vmem>>, vector<1x1x1x9x128xbf16>
    %70 = vector.shape_cast %69 : vector<1x1x1x9x128xbf16> to vector<9x128xbf16>
    %71 = vector.shape_cast %68 : vector<9x128xbf16> to vector<1x1x1x9x128xbf16>
    tpu.vector_store %arg15[%c0_43, %c0_44, %c0_45, %c0_46, %c0_47], %71 {strides = array<i32>} : memref<1x2x4x9x128xbf16, #tpu.memory_space<vmem>>, vector<1x1x1x9x128xbf16>,
    %cst_48 = arith.constant dense<0.000000e+00> : vector<9x8xf32>
    %72 = tpu.matmul %67, %55, %cst_48 {dimension_numbers = #tpu.dot_dimension_numbers<[1], [0], [0], [1], [0, 0, 1, 1], [], []>} : vector<9x9xbf16>, vector<9x8xbf16>, vector<9x8xf32> -> vector<9x8xf32>
    %c0_49 = arith.constant 0 : index
    %c0_50 = arith.constant 0 : index
    %73 = vector.load %arg16[%c0_49, %c0_50] : memref<18x32xf32, #tpu.memory_space<vmem>>, vector<9x8xf32>
    %74 = arith.addf %73, %72 : vector<9x8xf32>
    %c0_51 = arith.constant 0 : index
    %c0_52 = arith.constant 0 : index
    %75 = vector.load %arg16[%c0_51, %c0_52] : memref<18x32xf32, #tpu.memory_space<vmem>>, vector<9x8xf32>
    tpu.vector_store %arg16[%c0_51, %c0_52], %74 {strides = array<i32>} : memref<18x32xf32, #tpu.memory_space<vmem>>, vector<9x8xf32>,
    %c0_53 = arith.constant 0 : index
    %c8 = arith.constant 8 : index
    %76 = vector.load %arg17[%c0_53, %c8] : memref<18x96xbf16, #tpu.memory_space<vmem>>, vector<9x8xbf16>
    %c0_54 = arith.constant 0 : index
    %c40 = arith.constant 40 : index
    %77 = vector.load %arg17[%c0_54, %c40] : memref<18x96xbf16, #tpu.memory_space<vmem>>, vector<9x8xbf16>
    %c0_55 = arith.constant 0 : index
    %c72 = arith.constant 72 : index
    %78 = vector.load %arg17[%c0_55, %c72] : memref<18x96xbf16, #tpu.memory_space<vmem>>, vector<9x8xbf16>
    %cst_56 = arith.constant dense<0.000000e+00> : vector<9x9xf32>
    %79 = tpu.matmul %76, %77, %cst_56 {dimension_numbers = #tpu.dot_dimension_numbers<[1], [1], [0], [0], [0, 0, 1, 0], [], []>} : vector<9x8xbf16>, vector<9x8xbf16>, vector<9x9xf32> -> vector<9x9xf32>
    %cst_57 = arith.constant dense<0xFF800000> : vector<9xf32>
    %80 = vector.multi_reduction <maximumf>, %79, %cst_57 [1] : vector<9x9xf32> to vector<9xf32>
    %81 = vector.shape_cast %80 : vector<9xf32> to vector<9x1xf32>
    %82 = vector.broadcast %81 : vector<9x1xf32> to vector<9x9xf32>
    %83 = arith.subf %79, %82 : vector<9x9xf32>
    %84 = math.exp %83 : vector<9x9xf32>
    %cst_58 = arith.constant dense<0.000000e+00> : vector<9xf32>
    %85 = vector.multi_reduction <add>, %84, %cst_58 [1] : vector<9x9xf32> to vector<9xf32>
    %86 = vector.shape_cast %85 : vector<9xf32> to vector<9x1xf32>
    %87 = tpu.reciprocal %86 {approx = true} : vector<9x1xf32> -> vector<9x1xf32>
    %88 = vector.broadcast %87 : vector<9x1xf32> to vector<9x9xf32>
    %89 = arith.mulf %84, %88 : vector<9x9xf32>
    %90 = arith.truncf %89 : vector<9x9xf32> to vector<9x9xbf16>
    %91 = tpu.concatenate %90, %52 in 1 : vector<9x9xbf16>, vector<9x119xbf16> -> vector<9x128xbf16>
    %c0_59 = arith.constant 0 : index
    %c0_60 = arith.constant 0 : index
    %c1 = arith.constant 1 : index
    %c0_61 = arith.constant 0 : index
    %c0_62 = arith.constant 0 : index
    %92 = vector.load %arg15[%c0_59, %c0_60, %c1, %c0_61, %c0_62] : memref<1x2x4x9x128xbf16, #tpu.memory_space<vmem>>, vector<1x1x1x9x128xbf16>
    %93 = vector.shape_cast %92 : vector<1x1x1x9x128xbf16> to vector<9x128xbf16>
    %94 = vector.shape_cast %91 : vector<9x128xbf16> to vector<1x1x1x9x128xbf16>
    tpu.vector_store %arg15[%c0_59, %c0_60, %c1, %c0_61, %c0_62], %94 {strides = array<i32>} : memref<1x2x4x9x128xbf16, #tpu.memory_space<vmem>>, vector<1x1x1x9x128xbf16>,
    %cst_63 = arith.constant dense<0.000000e+00> : vector<9x8xf32>
    %95 = tpu.matmul %90, %78, %cst_63 {dimension_numbers = #tpu.dot_dimension_numbers<[1], [0], [0], [1], [0, 0, 1, 1], [], []>} : vector<9x9xbf16>, vector<9x8xbf16>, vector<9x8xf32> -> vector<9x8xf32>
    %c0_64 = arith.constant 0 : index
    %c8_65 = arith.constant 8 : index
    %96 = vector.load %arg16[%c0_64, %c8_65] : memref<18x32xf32, #tpu.memory_space<vmem>>, vector<9x8xf32>
    %97 = arith.addf %96, %95 : vector<9x8xf32>
    %c0_66 = arith.constant 0 : index
    %c8_67 = arith.constant 8 : index
    %98 = vector.load %arg16[%c0_66, %c8_67] : memref<18x32xf32, #tpu.memory_space<vmem>>, vector<9x8xf32>
    tpu.vector_store %arg16[%c0_66, %c8_67], %97 {strides = array<i32>} : memref<18x32xf32, #tpu.memory_space<vmem>>, vector<9x8xf32>,
    %c0_68 = arith.constant 0 : index
    %c16 = arith.constant 16 : index
    %99 = vector.load %arg17[%c0_68, %c16] : memref<18x96xbf16, #tpu.memory_space<vmem>>, vector<9x8xbf16>
    %c0_69 = arith.constant 0 : index
    %c48 = arith.constant 48 : index
    %100 = vector.load %arg17[%c0_69, %c48] : memref<18x96xbf16, #tpu.memory_space<vmem>>, vector<9x8xbf16>
    %c0_70 = arith.constant 0 : index
    %c80 = arith.constant 80 : index
    %101 = vector.load %arg17[%c0_70, %c80] : memref<18x96xbf16, #tpu.memory_space<vmem>>, vector<9x8xbf16>
    %cst_71 = arith.constant dense<0.000000e+00> : vector<9x9xf32>
    %102 = tpu.matmul %99, %100, %cst_71 {dimension_numbers = #tpu.dot_dimension_numbers<[1], [1], [0], [0], [0, 0, 1, 0], [], []>} : vector<9x8xbf16>, vector<9x8xbf16>, vector<9x9xf32> -> vector<9x9xf32>
    %cst_72 = arith.constant dense<0xFF800000> : vector<9xf32>
    %103 = vector.multi_reduction <maximumf>, %102, %cst_72 [1] : vector<9x9xf32> to vector<9xf32>
    %104 = vector.shape_cast %103 : vector<9xf32> to vector<9x1xf32>
    %105 = vector.broadcast %104 : vector<9x1xf32> to vector<9x9xf32>
    %106 = arith.subf %102, %105 : vector<9x9xf32>
    %107 = math.exp %106 : vector<9x9xf32>
    %cst_73 = arith.constant dense<0.000000e+00> : vector<9xf32>
    %108 = vector.multi_reduction <add>, %107, %cst_73 [1] : vector<9x9xf32> to vector<9xf32>
    %109 = vector.shape_cast %108 : vector<9xf32> to vector<9x1xf32>
    %110 = tpu.reciprocal %109 {approx = true} : vector<9x1xf32> -> vector<9x1xf32>
    %111 = vector.broadcast %110 : vector<9x1xf32> to vector<9x9xf32>
    %112 = arith.mulf %107, %111 : vector<9x9xf32>
    %113 = arith.truncf %112 : vector<9x9xf32> to vector<9x9xbf16>
    %114 = tpu.concatenate %113, %52 in 1 : vector<9x9xbf16>, vector<9x119xbf16> -> vector<9x128xbf16>
    %c0_74 = arith.constant 0 : index
    %c0_75 = arith.constant 0 : index
    %c2 = arith.constant 2 : index
    %c0_76 = arith.constant 0 : index
    %c0_77 = arith.constant 0 : index
    %115 = vector.load %arg15[%c0_74, %c0_75, %c2, %c0_76, %c0_77] : memref<1x2x4x9x128xbf16, #tpu.memory_space<vmem>>, vector<1x1x1x9x128xbf16>
    %116 = vector.shape_cast %115 : vector<1x1x1x9x128xbf16> to vector<9x128xbf16>
    %117 = vector.shape_cast %114 : vector<9x128xbf16> to vector<1x1x1x9x128xbf16>
    tpu.vector_store %arg15[%c0_74, %c0_75, %c2, %c0_76, %c0_77], %117 {strides = array<i32>} : memref<1x2x4x9x128xbf16, #tpu.memory_space<vmem>>, vector<1x1x1x9x128xbf16>,
    %cst_78 = arith.constant dense<0.000000e+00> : vector<9x8xf32>
    %118 = tpu.matmul %113, %101, %cst_78 {dimension_numbers = #tpu.dot_dimension_numbers<[1], [0], [0], [1], [0, 0, 1, 1], [], []>} : vector<9x9xbf16>, vector<9x8xbf16>, vector<9x8xf32> -> vector<9x8xf32>
    %c0_79 = arith.constant 0 : index
    %c16_80 = arith.constant 16 : index
    %119 = vector.load %arg16[%c0_79, %c16_80] : memref<18x32xf32, #tpu.memory_space<vmem>>, vector<9x8xf32>
    %120 = arith.addf %119, %118 : vector<9x8xf32>
    %c0_81 = arith.constant 0 : index
    %c16_82 = arith.constant 16 : index
    %121 = vector.load %arg16[%c0_81, %c16_82] : memref<18x32xf32, #tpu.memory_space<vmem>>, vector<9x8xf32>
    tpu.vector_store %arg16[%c0_81, %c16_82], %120 {strides = array<i32>} : memref<18x32xf32, #tpu.memory_space<vmem>>, vector<9x8xf32>,
    %c0_83 = arith.constant 0 : index
    %c24 = arith.constant 24 : index
    %122 = vector.load %arg17[%c0_83, %c24] : memref<18x96xbf16, #tpu.memory_space<vmem>>, vector<9x8xbf16>
    %c0_84 = arith.constant 0 : index
    %c56 = arith.constant 56 : index
    %123 = vector.load %arg17[%c0_84, %c56] : memref<18x96xbf16, #tpu.memory_space<vmem>>, vector<9x8xbf16>
    %c0_85 = arith.constant 0 : index
    %c88 = arith.constant 88 : index
    %124 = vector.load %arg17[%c0_85, %c88] : memref<18x96xbf16, #tpu.memory_space<vmem>>, vector<9x8xbf16>
    %cst_86 = arith.constant dense<0.000000e+00> : vector<9x9xf32>
    %125 = tpu.matmul %122, %123, %cst_86 {dimension_numbers = #tpu.dot_dimension_numbers<[1], [1], [0], [0], [0, 0, 1, 0], [], []>} : vector<9x8xbf16>, vector<9x8xbf16>, vector<9x9xf32> -> vector<9x9xf32>
    %cst_87 = arith.constant dense<0xFF800000> : vector<9xf32>
    %126 = vector.multi_reduction <maximumf>, %125, %cst_87 [1] : vector<9x9xf32> to vector<9xf32>
    %127 = vector.shape_cast %126 : vector<9xf32> to vector<9x1xf32>
    %128 = vector.broadcast %127 : vector<9x1xf32> to vector<9x9xf32>
    %129 = arith.subf %125, %128 : vector<9x9xf32>
    %130 = math.exp %129 : vector<9x9xf32>
    %cst_88 = arith.constant dense<0.000000e+00> : vector<9xf32>
    %131 = vector.multi_reduction <add>, %130, %cst_88 [1] : vector<9x9xf32> to vector<9xf32>
    %132 = vector.shape_cast %131 : vector<9xf32> to vector<9x1xf32>
    %133 = tpu.reciprocal %132 {approx = true} : vector<9x1xf32> -> vector<9x1xf32>
    %134 = vector.broadcast %133 : vector<9x1xf32> to vector<9x9xf32>
    %135 = arith.mulf %130, %134 : vector<9x9xf32>
    %136 = arith.truncf %135 : vector<9x9xf32> to vector<9x9xbf16>
    %137 = tpu.concatenate %136, %52 in 1 : vector<9x9xbf16>, vector<9x119xbf16> -> vector<9x128xbf16>
    %c0_89 = arith.constant 0 : index
    %c0_90 = arith.constant 0 : index
    %c3 = arith.constant 3 : index
    %c0_91 = arith.constant 0 : index
    %c0_92 = arith.constant 0 : index
    %138 = vector.load %arg15[%c0_89, %c0_90, %c3, %c0_91, %c0_92] : memref<1x2x4x9x128xbf16, #tpu.memory_space<vmem>>, vector<1x1x1x9x128xbf16>
    %139 = vector.shape_cast %138 : vector<1x1x1x9x128xbf16> to vector<9x128xbf16>
    %140 = vector.shape_cast %137 : vector<9x128xbf16> to vector<1x1x1x9x128xbf16>
    tpu.vector_store %arg15[%c0_89, %c0_90, %c3, %c0_91, %c0_92], %140 {strides = array<i32>} : memref<1x2x4x9x128xbf16, #tpu.memory_space<vmem>>, vector<1x1x1x9x128xbf16>,
    %cst_93 = arith.constant dense<0.000000e+00> : vector<9x8xf32>
    %141 = tpu.matmul %136, %124, %cst_93 {dimension_numbers = #tpu.dot_dimension_numbers<[1], [0], [0], [1], [0, 0, 1, 1], [], []>} : vector<9x9xbf16>, vector<9x8xbf16>, vector<9x8xf32> -> vector<9x8xf32>
    %c0_94 = arith.constant 0 : index
    %c24_95 = arith.constant 24 : index
    %142 = vector.load %arg16[%c0_94, %c24_95] : memref<18x32xf32, #tpu.memory_space<vmem>>, vector<9x8xf32>
    %143 = arith.addf %142, %141 : vector<9x8xf32>
    %c0_96 = arith.constant 0 : index
    %c24_97 = arith.constant 24 : index
    %144 = vector.load %arg16[%c0_96, %c24_97] : memref<18x32xf32, #tpu.memory_space<vmem>>, vector<9x8xf32>
    tpu.vector_store %arg16[%c0_96, %c24_97], %143 {strides = array<i32>} : memref<18x32xf32, #tpu.memory_space<vmem>>, vector<9x8xf32>,
    %c9 = arith.constant 9 : index
    %c0_98 = arith.constant 0 : index
    %145 = vector.load %arg17[%c9, %c0_98] : memref<18x96xbf16, #tpu.memory_space<vmem>>, vector<9x8xbf16>
    %c9_99 = arith.constant 9 : index
    %c32_100 = arith.constant 32 : index
    %146 = vector.load %arg17[%c9_99, %c32_100] : memref<18x96xbf16, #tpu.memory_space<vmem>>, vector<9x8xbf16>
    %c9_101 = arith.constant 9 : index
    %c64_102 = arith.constant 64 : index
    %147 = vector.load %arg17[%c9_101, %c64_102] : memref<18x96xbf16, #tpu.memory_space<vmem>>, vector<9x8xbf16>
    %cst_103 = arith.constant dense<0.000000e+00> : vector<9x9xf32>
    %148 = tpu.matmul %145, %146, %cst_103 {dimension_numbers = #tpu.dot_dimension_numbers<[1], [1], [0], [0], [0, 0, 1, 0], [], []>} : vector<9x8xbf16>, vector<9x8xbf16>, vector<9x9xf32> -> vector<9x9xf32>
    %cst_104 = arith.constant dense<0xFF800000> : vector<9xf32>
    %149 = vector.multi_reduction <maximumf>, %148, %cst_104 [1] : vector<9x9xf32> to vector<9xf32>
    %150 = vector.shape_cast %149 : vector<9xf32> to vector<9x1xf32>
    %151 = vector.broadcast %150 : vector<9x1xf32> to vector<9x9xf32>
    %152 = arith.subf %148, %151 : vector<9x9xf32>
    %153 = math.exp %152 : vector<9x9xf32>
    %cst_105 = arith.constant dense<0.000000e+00> : vector<9xf32>
    %154 = vector.multi_reduction <add>, %153, %cst_105 [1] : vector<9x9xf32> to vector<9xf32>
    %155 = vector.shape_cast %154 : vector<9xf32> to vector<9x1xf32>
    %156 = tpu.reciprocal %155 {approx = true} : vector<9x1xf32> -> vector<9x1xf32>
    %157 = vector.broadcast %156 : vector<9x1xf32> to vector<9x9xf32>
    %158 = arith.mulf %153, %157 : vector<9x9xf32>
    %159 = arith.truncf %158 : vector<9x9xf32> to vector<9x9xbf16>
    %160 = tpu.concatenate %159, %52 in 1 : vector<9x9xbf16>, vector<9x119xbf16> -> vector<9x128xbf16>
    %c0_106 = arith.constant 0 : index
    %c1_107 = arith.constant 1 : index
    %c0_108 = arith.constant 0 : index
    %c0_109 = arith.constant 0 : index
    %c0_110 = arith.constant 0 : index
    %161 = vector.load %arg15[%c0_106, %c1_107, %c0_108, %c0_109, %c0_110] : memref<1x2x4x9x128xbf16, #tpu.memory_space<vmem>>, vector<1x1x1x9x128xbf16>
    %162 = vector.shape_cast %161 : vector<1x1x1x9x128xbf16> to vector<9x128xbf16>
    %163 = vector.shape_cast %160 : vector<9x128xbf16> to vector<1x1x1x9x128xbf16>
    tpu.vector_store %arg15[%c0_106, %c1_107, %c0_108, %c0_109, %c0_110], %163 {strides = array<i32>} : memref<1x2x4x9x128xbf16, #tpu.memory_space<vmem>>, vector<1x1x1x9x128xbf16>,
    %cst_111 = arith.constant dense<0.000000e+00> : vector<9x8xf32>
    %164 = tpu.matmul %159, %147, %cst_111 {dimension_numbers = #tpu.dot_dimension_numbers<[1], [0], [0], [1], [0, 0, 1, 1], [], []>} : vector<9x9xbf16>, vector<9x8xbf16>, vector<9x8xf32> -> vector<9x8xf32>
    %c9_112 = arith.constant 9 : index
    %c0_113 = arith.constant 0 : index
    %165 = vector.load %arg16[%c9_112, %c0_113] : memref<18x32xf32, #tpu.memory_space<vmem>>, vector<9x8xf32>
    %166 = arith.addf %165, %164 : vector<9x8xf32>
    %c9_114 = arith.constant 9 : index
    %c0_115 = arith.constant 0 : index
    %167 = vector.load %arg16[%c9_114, %c0_115] : memref<18x32xf32, #tpu.memory_space<vmem>>, vector<9x8xf32>
    tpu.vector_store %arg16[%c9_114, %c0_115], %166 {strides = array<i32>} : memref<18x32xf32, #tpu.memory_space<vmem>>, vector<9x8xf32>,
    %c9_116 = arith.constant 9 : index
    %c8_117 = arith.constant 8 : index
    %168 = vector.load %arg17[%c9_116, %c8_117] : memref<18x96xbf16, #tpu.memory_space<vmem>>, vector<9x8xbf16>
    %c9_118 = arith.constant 9 : index
    %c40_119 = arith.constant 40 : index
    %169 = vector.load %arg17[%c9_118, %c40_119] : memref<18x96xbf16, #tpu.memory_space<vmem>>, vector<9x8xbf16>
    %c9_120 = arith.constant 9 : index
    %c72_121 = arith.constant 72 : index
    %170 = vector.load %arg17[%c9_120, %c72_121] : memref<18x96xbf16, #tpu.memory_space<vmem>>, vector<9x8xbf16>
    %cst_122 = arith.constant dense<0.000000e+00> : vector<9x9xf32>
    %171 = tpu.matmul %168, %169, %cst_122 {dimension_numbers = #tpu.dot_dimension_numbers<[1], [1], [0], [0], [0, 0, 1, 0], [], []>} : vector<9x8xbf16>, vector<9x8xbf16>, vector<9x9xf32> -> vector<9x9xf32>
    %cst_123 = arith.constant dense<0xFF800000> : vector<9xf32>
    %172 = vector.multi_reduction <maximumf>, %171, %cst_123 [1] : vector<9x9xf32> to vector<9xf32>
    %173 = vector.shape_cast %172 : vector<9xf32> to vector<9x1xf32>
    %174 = vector.broadcast %173 : vector<9x1xf32> to vector<9x9xf32>
    %175 = arith.subf %171, %174 : vector<9x9xf32>
    %176 = math.exp %175 : vector<9x9xf32>
    %cst_124 = arith.constant dense<0.000000e+00> : vector<9xf32>
    %177 = vector.multi_reduction <add>, %176, %cst_124 [1] : vector<9x9xf32> to vector<9xf32>
    %178 = vector.shape_cast %177 : vector<9xf32> to vector<9x1xf32>
    %179 = tpu.reciprocal %178 {approx = true} : vector<9x1xf32> -> vector<9x1xf32>
    %180 = vector.broadcast %179 : vector<9x1xf32> to vector<9x9xf32>
    %181 = arith.mulf %176, %180 : vector<9x9xf32>
    %182 = arith.truncf %181 : vector<9x9xf32> to vector<9x9xbf16>
    %183 = tpu.concatenate %182, %52 in 1 : vector<9x9xbf16>, vector<9x119xbf16> -> vector<9x128xbf16>
    %c0_125 = arith.constant 0 : index
    %c1_126 = arith.constant 1 : index
    %c1_127 = arith.constant 1 : index
    %c0_128 = arith.constant 0 : index
    %c0_129 = arith.constant 0 : index
    %184 = vector.load %arg15[%c0_125, %c1_126, %c1_127, %c0_128, %c0_129] : memref<1x2x4x9x128xbf16, #tpu.memory_space<vmem>>, vector<1x1x1x9x128xbf16>
    %185 = vector.shape_cast %184 : vector<1x1x1x9x128xbf16> to vector<9x128xbf16>
    %186 = vector.shape_cast %183 : vector<9x128xbf16> to vector<1x1x1x9x128xbf16>
    tpu.vector_store %arg15[%c0_125, %c1_126, %c1_127, %c0_128, %c0_129], %186 {strides = array<i32>} : memref<1x2x4x9x128xbf16, #tpu.memory_space<vmem>>, vector<1x1x1x9x128xbf16>,
    %cst_130 = arith.constant dense<0.000000e+00> : vector<9x8xf32>
    %187 = tpu.matmul %182, %170, %cst_130 {dimension_numbers = #tpu.dot_dimension_numbers<[1], [0], [0], [1], [0, 0, 1, 1], [], []>} : vector<9x9xbf16>, vector<9x8xbf16>, vector<9x8xf32> -> vector<9x8xf32>
    %c9_131 = arith.constant 9 : index
    %c8_132 = arith.constant 8 : index
    %188 = vector.load %arg16[%c9_131, %c8_132] : memref<18x32xf32, #tpu.memory_space<vmem>>, vector<9x8xf32>
    %189 = arith.addf %188, %187 : vector<9x8xf32>
    %c9_133 = arith.constant 9 : index
    %c8_134 = arith.constant 8 : index
    %190 = vector.load %arg16[%c9_133, %c8_134] : memref<18x32xf32, #tpu.memory_space<vmem>>, vector<9x8xf32>
    tpu.vector_store %arg16[%c9_133, %c8_134], %189 {strides = array<i32>} : memref<18x32xf32, #tpu.memory_space<vmem>>, vector<9x8xf32>,
    %c9_135 = arith.constant 9 : index
    %c16_136 = arith.constant 16 : index
    %191 = vector.load %arg17[%c9_135, %c16_136] : memref<18x96xbf16, #tpu.memory_space<vmem>>, vector<9x8xbf16>
    %c9_137 = arith.constant 9 : index
    %c48_138 = arith.constant 48 : index
    %192 = vector.load %arg17[%c9_137, %c48_138] : memref<18x96xbf16, #tpu.memory_space<vmem>>, vector<9x8xbf16>
    %c9_139 = arith.constant 9 : index
    %c80_140 = arith.constant 80 : index
    %193 = vector.load %arg17[%c9_139, %c80_140] : memref<18x96xbf16, #tpu.memory_space<vmem>>, vector<9x8xbf16>
    %cst_141 = arith.constant dense<0.000000e+00> : vector<9x9xf32>
    %194 = tpu.matmul %191, %192, %cst_141 {dimension_numbers = #tpu.dot_dimension_numbers<[1], [1], [0], [0], [0, 0, 1, 0], [], []>} : vector<9x8xbf16>, vector<9x8xbf16>, vector<9x9xf32> -> vector<9x9xf32>
    %cst_142 = arith.constant dense<0xFF800000> : vector<9xf32>
    %195 = vector.multi_reduction <maximumf>, %194, %cst_142 [1] : vector<9x9xf32> to vector<9xf32>
    %196 = vector.shape_cast %195 : vector<9xf32> to vector<9x1xf32>
    %197 = vector.broadcast %196 : vector<9x1xf32> to vector<9x9xf32>
    %198 = arith.subf %194, %197 : vector<9x9xf32>
    %199 = math.exp %198 : vector<9x9xf32>
    %cst_143 = arith.constant dense<0.000000e+00> : vector<9xf32>
    %200 = vector.multi_reduction <add>, %199, %cst_143 [1] : vector<9x9xf32> to vector<9xf32>
    %201 = vector.shape_cast %200 : vector<9xf32> to vector<9x1xf32>
    %202 = tpu.reciprocal %201 {approx = true} : vector<9x1xf32> -> vector<9x1xf32>
    %203 = vector.broadcast %202 : vector<9x1xf32> to vector<9x9xf32>
    %204 = arith.mulf %199, %203 : vector<9x9xf32>
    %205 = arith.truncf %204 : vector<9x9xf32> to vector<9x9xbf16>
    %206 = tpu.concatenate %205, %52 in 1 : vector<9x9xbf16>, vector<9x119xbf16> -> vector<9x128xbf16>
    %c0_144 = arith.constant 0 : index
    %c1_145 = arith.constant 1 : index
    %c2_146 = arith.constant 2 : index
    %c0_147 = arith.constant 0 : index
    %c0_148 = arith.constant 0 : index
    %207 = vector.load %arg15[%c0_144, %c1_145, %c2_146, %c0_147, %c0_148] : memref<1x2x4x9x128xbf16, #tpu.memory_space<vmem>>, vector<1x1x1x9x128xbf16>
    %208 = vector.shape_cast %207 : vector<1x1x1x9x128xbf16> to vector<9x128xbf16>
    %209 = vector.shape_cast %206 : vector<9x128xbf16> to vector<1x1x1x9x128xbf16>
    tpu.vector_store %arg15[%c0_144, %c1_145, %c2_146, %c0_147, %c0_148], %209 {strides = array<i32>} : memref<1x2x4x9x128xbf16, #tpu.memory_space<vmem>>, vector<1x1x1x9x128xbf16>,
    %cst_149 = arith.constant dense<0.000000e+00> : vector<9x8xf32>
    %210 = tpu.matmul %205, %193, %cst_149 {dimension_numbers = #tpu.dot_dimension_numbers<[1], [0], [0], [1], [0, 0, 1, 1], [], []>} : vector<9x9xbf16>, vector<9x8xbf16>, vector<9x8xf32> -> vector<9x8xf32>
    %c9_150 = arith.constant 9 : index
    %c16_151 = arith.constant 16 : index
    %211 = vector.load %arg16[%c9_150, %c16_151] : memref<18x32xf32, #tpu.memory_space<vmem>>, vector<9x8xf32>
    %212 = arith.addf %211, %210 : vector<9x8xf32>
    %c9_152 = arith.constant 9 : index
    %c16_153 = arith.constant 16 : index
    %213 = vector.load %arg16[%c9_152, %c16_153] : memref<18x32xf32, #tpu.memory_space<vmem>>, vector<9x8xf32>
    tpu.vector_store %arg16[%c9_152, %c16_153], %212 {strides = array<i32>} : memref<18x32xf32, #tpu.memory_space<vmem>>, vector<9x8xf32>,
    %c9_154 = arith.constant 9 : index
    %c24_155 = arith.constant 24 : index
    %214 = vector.load %arg17[%c9_154, %c24_155] : memref<18x96xbf16, #tpu.memory_space<vmem>>, vector<9x8xbf16>
    %c9_156 = arith.constant 9 : index
    %c56_157 = arith.constant 56 : index
    %215 = vector.load %arg17[%c9_156, %c56_157] : memref<18x96xbf16, #tpu.memory_space<vmem>>, vector<9x8xbf16>
    %c9_158 = arith.constant 9 : index
    %c88_159 = arith.constant 88 : index
    %216 = vector.load %arg17[%c9_158, %c88_159] : memref<18x96xbf16, #tpu.memory_space<vmem>>, vector<9x8xbf16>
    %cst_160 = arith.constant dense<0.000000e+00> : vector<9x9xf32>
    %217 = tpu.matmul %214, %215, %cst_160 {dimension_numbers = #tpu.dot_dimension_numbers<[1], [1], [0], [0], [0, 0, 1, 0], [], []>} : vector<9x8xbf16>, vector<9x8xbf16>, vector<9x9xf32> -> vector<9x9xf32>
    %cst_161 = arith.constant dense<0xFF800000> : vector<9xf32>
    %218 = vector.multi_reduction <maximumf>, %217, %cst_161 [1] : vector<9x9xf32> to vector<9xf32>
    %219 = vector.shape_cast %218 : vector<9xf32> to vector<9x1xf32>
    %220 = vector.broadcast %219 : vector<9x1xf32> to vector<9x9xf32>
    %221 = arith.subf %217, %220 : vector<9x9xf32>
    %222 = math.exp %221 : vector<9x9xf32>
    %cst_162 = arith.constant dense<0.000000e+00> : vector<9xf32>
    %223 = vector.multi_reduction <add>, %222, %cst_162 [1] : vector<9x9xf32> to vector<9xf32>
    %224 = vector.shape_cast %223 : vector<9xf32> to vector<9x1xf32>
    %225 = tpu.reciprocal %224 {approx = true} : vector<9x1xf32> -> vector<9x1xf32>
    %226 = vector.broadcast %225 : vector<9x1xf32> to vector<9x9xf32>
    %227 = arith.mulf %222, %226 : vector<9x9xf32>
    %228 = arith.truncf %227 : vector<9x9xf32> to vector<9x9xbf16>
    %229 = tpu.concatenate %228, %52 in 1 : vector<9x9xbf16>, vector<9x119xbf16> -> vector<9x128xbf16>
    %c0_163 = arith.constant 0 : index
    %c1_164 = arith.constant 1 : index
    %c3_165 = arith.constant 3 : index
    %c0_166 = arith.constant 0 : index
    %c0_167 = arith.constant 0 : index
    %230 = vector.load %arg15[%c0_163, %c1_164, %c3_165, %c0_166, %c0_167] : memref<1x2x4x9x128xbf16, #tpu.memory_space<vmem>>, vector<1x1x1x9x128xbf16>
    %231 = vector.shape_cast %230 : vector<1x1x1x9x128xbf16> to vector<9x128xbf16>
    %232 = vector.shape_cast %229 : vector<9x128xbf16> to vector<1x1x1x9x128xbf16>
    tpu.vector_store %arg15[%c0_163, %c1_164, %c3_165, %c0_166, %c0_167], %232 {strides = array<i32>} : memref<1x2x4x9x128xbf16, #tpu.memory_space<vmem>>, vector<1x1x1x9x128xbf16>,
    %cst_168 = arith.constant dense<0.000000e+00> : vector<9x8xf32>
    %233 = tpu.matmul %228, %216, %cst_168 {dimension_numbers = #tpu.dot_dimension_numbers<[1], [0], [0], [1], [0, 0, 1, 1], [], []>} : vector<9x9xbf16>, vector<9x8xbf16>, vector<9x8xf32> -> vector<9x8xf32>
    %c9_169 = arith.constant 9 : index
    %c24_170 = arith.constant 24 : index
    %234 = vector.load %arg16[%c9_169, %c24_170] : memref<18x32xf32, #tpu.memory_space<vmem>>, vector<9x8xf32>
    %235 = arith.addf %234, %233 : vector<9x8xf32>
    %c9_171 = arith.constant 9 : index
    %c24_172 = arith.constant 24 : index
    %236 = vector.load %arg16[%c9_171, %c24_172] : memref<18x32xf32, #tpu.memory_space<vmem>>, vector<9x8xf32>
    tpu.vector_store %arg16[%c9_171, %c24_172], %235 {strides = array<i32>} : memref<18x32xf32, #tpu.memory_space<vmem>>, vector<9x8xf32>,
    %c0_173 = arith.constant 0 : index
    %c0_174 = arith.constant 0 : index
    %237 = vector.load %arg16[%c0_173, %c0_174] : memref<18x32xf32, #tpu.memory_space<vmem>>, vector<18x32xf32>
    %cst_175 = arith.constant dense<0.000000e+00> : vector<18xf32>
    %238 = vector.multi_reduction <add>, %237, %cst_175 [1] : vector<18x32xf32> to vector<18xf32>
    %239 = vector.shape_cast %238 : vector<18xf32> to vector<18x1xf32>
    %cst_176 = arith.constant 3.200000e+01 : f32
    %240 = vector.broadcast %cst_176 : f32 to vector<18x1xf32>
    %241 = arith.divf %239, %240 : vector<18x1xf32>
    %242 = vector.broadcast %241 : vector<18x1xf32> to vector<18x32xf32>
    %243 = arith.subf %237, %242 : vector<18x32xf32>
    %244 = arith.mulf %243, %243 : vector<18x32xf32>
    %cst_177 = arith.constant dense<0.000000e+00> : vector<18xf32>
    %245 = vector.multi_reduction <add>, %244, %cst_177 [1] : vector<18x32xf32> to vector<18xf32>
    %246 = vector.shape_cast %245 : vector<18xf32> to vector<18x1xf32>
    %cst_178 = arith.constant 3.200000e+01 : f32
    %247 = vector.broadcast %cst_178 : f32 to vector<18x1xf32>
    %248 = arith.divf %246, %247 : vector<18x1xf32>
    %249 = vector.broadcast %241 : vector<18x1xf32> to vector<18x32xf32>
    %250 = arith.subf %237, %249 : vector<18x32xf32>
    %cst_179 = arith.constant 9.99999974E-6 : f32
    %251 = vector.broadcast %cst_179 : f32 to vector<18x1xf32>
    %252 = arith.addf %248, %251 : vector<18x1xf32>
    %253 = math.rsqrt %252 : vector<18x1xf32>
    %254 = vector.broadcast %253 : vector<18x1xf32> to vector<18x32xf32>
    %255 = arith.mulf %250, %254 : vector<18x32xf32>
    %256 = vector.broadcast %10 : vector<1x32xf32> to vector<18x32xf32>
    %257 = arith.mulf %255, %256 : vector<18x32xf32>
    %258 = vector.broadcast %12 : vector<1x32xf32> to vector<18x32xf32>
    %259 = arith.addf %257, %258 : vector<18x32xf32>
    %260 = arith.truncf %259 : vector<18x32xf32> to vector<18x32xbf16>
    %cst_180 = arith.constant dense<0.000000e+00> : vector<18x64xf32>
    %261 = tpu.matmul %260, %20, %cst_180 {dimension_numbers = #tpu.dot_dimension_numbers<[1], [0], [0], [1], [0, 0, 1, 1], [], []>} : vector<18x32xbf16>, vector<32x64xbf16>, vector<18x64xf32> -> vector<18x64xf32>
    %262 = vector.broadcast %14 : vector<1x64xf32> to vector<18x64xf32>
    %263 = arith.addf %261, %262 : vector<18x64xf32>
    %cst_181 = arith.constant 5.000000e-01 : f32
    %264 = vector.broadcast %cst_181 : f32 to vector<18x64xf32>
    %265 = arith.mulf %264, %263 : vector<18x64xf32>
    %cst_182 = arith.constant 0.707106769 : f32
    %266 = vector.broadcast %cst_182 : f32 to vector<18x64xf32>
    %267 = arith.mulf %263, %266 : vector<18x64xf32>
    %cst_183 = arith.constant 0.000000e+00 : f32
    %268 = vector.broadcast %cst_183 : f32 to vector<18x64xf32>
    %269 = arith.cmpf oge, %267, %268 : vector<18x64xf32>
    %cst_184 = arith.constant 1.000000e+00 : f32
    %cst_185 = arith.constant -1.000000e+00 : f32
    %270 = vector.broadcast %cst_184 : f32 to vector<18x64xf32>
    %271 = vector.broadcast %cst_185 : f32 to vector<18x64xf32>
    %272 = arith.select %269, %270, %271 : vector<18x64xi1>, vector<18x64xf32>
    %273 = math.absf %267 : vector<18x64xf32>
    %cst_186 = arith.constant 0.327591091 : f32
    %274 = vector.broadcast %cst_186 : f32 to vector<18x64xf32>
    %275 = arith.mulf %274, %273 : vector<18x64xf32>
    %cst_187 = arith.constant 1.000000e+00 : f32
    %276 = vector.broadcast %cst_187 : f32 to vector<18x64xf32>
    %277 = arith.addf %276, %275 : vector<18x64xf32>
    %278 = tpu.reciprocal %277 {approx = true} : vector<18x64xf32> -> vector<18x64xf32>
    %cst_188 = arith.constant 1.06140542 : f32
    %279 = vector.broadcast %cst_188 : f32 to vector<18x64xf32>
    %280 = arith.mulf %279, %278 : vector<18x64xf32>
    %cst_189 = arith.constant -1.45315206 : f32
    %281 = vector.broadcast %cst_189 : f32 to vector<18x64xf32>
    %282 = arith.addf %280, %281 : vector<18x64xf32>
    %283 = arith.mulf %282, %278 : vector<18x64xf32>
    %cst_190 = arith.constant 1.42141378 : f32
    %284 = vector.broadcast %cst_190 : f32 to vector<18x64xf32>
    %285 = arith.addf %283, %284 : vector<18x64xf32>
    %286 = arith.mulf %285, %278 : vector<18x64xf32>
    %cst_191 = arith.constant -0.284496725 : f32
    %287 = vector.broadcast %cst_191 : f32 to vector<18x64xf32>
    %288 = arith.addf %286, %287 : vector<18x64xf32>
    %289 = arith.mulf %288, %278 : vector<18x64xf32>
    %cst_192 = arith.constant 0.254829586 : f32
    %290 = vector.broadcast %cst_192 : f32 to vector<18x64xf32>
    %291 = arith.addf %289, %290 : vector<18x64xf32>
    %292 = arith.mulf %291, %278 : vector<18x64xf32>
    %cst_193 = arith.constant 0.000000e+00 : f32
    %293 = vector.broadcast %cst_193 : f32 to vector<18x64xf32>
    %294 = arith.subf %293, %273 : vector<18x64xf32>
    %295 = arith.mulf %294, %273 : vector<18x64xf32>
    %296 = math.exp %295 : vector<18x64xf32>
    %297 = arith.mulf %292, %296 : vector<18x64xf32>
    %cst_194 = arith.constant 1.000000e+00 : f32
    %298 = vector.broadcast %cst_194 : f32 to vector<18x64xf32>
    %299 = arith.subf %298, %297 : vector<18x64xf32>
    %300 = arith.mulf %272, %299 : vector<18x64xf32>
    %cst_195 = arith.constant 1.000000e+00 : f32
    %301 = vector.broadcast %cst_195 : f32 to vector<18x64xf32>
    %302 = arith.addf %301, %300 : vector<18x64xf32>
    %303 = arith.mulf %265, %302 : vector<18x64xf32>
    %304 = arith.truncf %303 : vector<18x64xf32> to vector<18x64xbf16>
    %cst_196 = arith.constant dense<0.000000e+00> : vector<18x32xf32>
    %305 = tpu.matmul %304, %22, %cst_196 {dimension_numbers = #tpu.dot_dimension_numbers<[1], [0], [0], [1], [0, 0, 1, 1], [], []>} : vector<18x64xbf16>, vector<64x32xbf16>, vector<18x32xf32> -> vector<18x32xf32>
    %306 = vector.broadcast %16 : vector<1x32xf32> to vector<18x32xf32>
    %307 = arith.addf %305, %306 : vector<18x32xf32>
    %308 = arith.addf %237, %307 : vector<18x32xf32>
    %c0_197 = arith.constant 0 : index
    %c0_198 = arith.constant 0 : index
    %309 = vector.load %arg16[%c0_197, %c0_198] : memref<18x32xf32, #tpu.memory_space<vmem>>, vector<18x32xf32>
    tpu.vector_store %arg16[%c0_197, %c0_198], %308 {strides = array<i32>} : memref<18x32xf32, #tpu.memory_space<vmem>>, vector<18x32xf32>,
    %c1_i32 = arith.constant 1 : i32
    %310 = arith.cmpi eq, %arg0, %c1_i32 : i32
    %311 = arith.extui %310 : i1 to i32
    %c0_i32_199 = arith.constant 0 : i32
    %312 = arith.cmpi ne, %311, %c0_i32_199 : i32
    scf.if %312 {
      %c0_200 = arith.constant 0 : index
      %c0_201 = arith.constant 0 : index
      %313 = vector.load %arg16[%c0_200, %c0_201] : memref<18x32xf32, #tpu.memory_space<vmem>>, vector<1x32xf32>
      %c9_202 = arith.constant 9 : index
      %c0_203 = arith.constant 0 : index
      %314 = vector.load %arg16[%c9_202, %c0_203] : memref<18x32xf32, #tpu.memory_space<vmem>>, vector<1x32xf32>
      %315 = tpu.concatenate %313, %314 in 0 : vector<1x32xf32>, vector<1x32xf32> -> vector<2x32xf32>
      %c0_204 = arith.constant 0 : index
      %c0_205 = arith.constant 0 : index
      %316 = vector.load %arg10[%c0_204, %c0_205] : memref<1x32xf32, #tpu.memory_space<vmem>>, vector<1x32xf32>
      %c0_206 = arith.constant 0 : index
      %c0_207 = arith.constant 0 : index
      %317 = vector.load %arg11[%c0_206, %c0_207] : memref<1x32xf32, #tpu.memory_space<vmem>>, vector<1x32xf32>
      %cst_208 = arith.constant dense<0.000000e+00> : vector<2xf32>
      %318 = vector.multi_reduction <add>, %315, %cst_208 [1] : vector<2x32xf32> to vector<2xf32>
      %319 = vector.shape_cast %318 : vector<2xf32> to vector<2x1xf32>
      %cst_209 = arith.constant 3.200000e+01 : f32
      %320 = vector.broadcast %cst_209 : f32 to vector<2x1xf32>
      %321 = arith.divf %319, %320 : vector<2x1xf32>
      %322 = vector.broadcast %321 : vector<2x1xf32> to vector<2x32xf32>
      %323 = arith.subf %315, %322 : vector<2x32xf32>
      %324 = arith.mulf %323, %323 : vector<2x32xf32>
      %cst_210 = arith.constant dense<0.000000e+00> : vector<2xf32>
      %325 = vector.multi_reduction <add>, %324, %cst_210 [1] : vector<2x32xf32> to vector<2xf32>
      %326 = vector.shape_cast %325 : vector<2xf32> to vector<2x1xf32>
      %cst_211 = arith.constant 3.200000e+01 : f32
      %327 = vector.broadcast %cst_211 : f32 to vector<2x1xf32>
      %328 = arith.divf %326, %327 : vector<2x1xf32>
      %329 = vector.broadcast %321 : vector<2x1xf32> to vector<2x32xf32>
      %330 = arith.subf %315, %329 : vector<2x32xf32>
      %cst_212 = arith.constant 9.99999974E-6 : f32
      %331 = vector.broadcast %cst_212 : f32 to vector<2x1xf32>
      %332 = arith.addf %328, %331 : vector<2x1xf32>
      %333 = math.rsqrt %332 : vector<2x1xf32>
      %334 = vector.broadcast %333 : vector<2x1xf32> to vector<2x32xf32>
      %335 = arith.mulf %330, %334 : vector<2x32xf32>
      %336 = vector.broadcast %316 : vector<1x32xf32> to vector<2x32xf32>
      %337 = arith.mulf %335, %336 : vector<2x32xf32>
      %338 = vector.broadcast %317 : vector<1x32xf32> to vector<2x32xf32>
      %339 = arith.addf %337, %338 : vector<2x32xf32>
      %340 = arith.truncf %339 : vector<2x32xf32> to vector<2x32xbf16>
      %c0_213 = arith.constant 0 : index
      %c0_214 = arith.constant 0 : index
      %341 = vector.load %arg12[%c0_213, %c0_214] : memref<32x10xbf16, #tpu.memory_space<vmem>>, vector<32x10xbf16>
      %cst_215 = arith.constant dense<0.000000e+00> : vector<2x10xf32>
      %342 = tpu.matmul %340, %341, %cst_215 {dimension_numbers = #tpu.dot_dimension_numbers<[1], [0], [0], [1], [0, 0, 1, 1], [], []>} : vector<2x32xbf16>, vector<32x10xbf16>, vector<2x10xf32> -> vector<2x10xf32>
      %c0_216 = arith.constant 0 : index
      %c0_217 = arith.constant 0 : index
      %343 = vector.load %arg13[%c0_216, %c0_217] : memref<1x10xf32, #tpu.memory_space<vmem>>, vector<1x10xf32>
      %344 = vector.broadcast %343 : vector<1x10xf32> to vector<2x10xf32>
      %345 = arith.addf %342, %344 : vector<2x10xf32>
      %c0_218 = arith.constant 0 : index
      %c0_219 = arith.constant 0 : index
      %346 = vector.load %arg14[%c0_218, %c0_219] : memref<2x10xf32, #tpu.memory_space<vmem>>, vector<2x10xf32>
      tpu.vector_store %arg14[%c0_218, %c0_219], %345 {strides = array<i32>} : memref<2x10xf32, #tpu.memory_space<vmem>>, vector<2x10xf32>,
    } else {
    }
    return
  }
  func.func @transform_0(%arg0: i32) -> (i32, i32) {
    %c0_i32 = arith.constant 0 : i32
    %c0_i32_0 = arith.constant 0 : i32
    %c0_i32_1 = arith.constant 0 : i32
    return %c0_i32, %c0_i32_0 : i32, i32
  }
  func.func @transform_1(%arg0: i32) -> (i32, i32) {
    %c0_i32 = arith.constant 0 : i32
    %c0_i32_0 = arith.constant 0 : i32
    %c0_i32_1 = arith.constant 0 : i32
    return %c0_i32, %c0_i32_0 : i32, i32
  }
  func.func @transform_2(%arg0: i32) -> (i32, i32) {
    %c0_i32 = arith.constant 0 : i32
    %c0_i32_0 = arith.constant 0 : i32
    %c0_i32_1 = arith.constant 0 : i32
    return %c0_i32, %c0_i32_0 : i32, i32
  }
  func.func @transform_3(%arg0: i32) -> (i32, i32) {
    %c0_i32 = arith.constant 0 : i32
    %c0_i32_0 = arith.constant 0 : i32
    %c0_i32_1 = arith.constant 0 : i32
    return %c0_i32, %c0_i32_0 : i32, i32
  }
  func.func @transform_4(%arg0: i32) -> (i32, i32) {
    %c0_i32 = arith.constant 0 : i32
    %c0_i32_0 = arith.constant 0 : i32
    %c0_i32_1 = arith.constant 0 : i32
    return %c0_i32, %c0_i32_0 : i32, i32
  }
  func.func @transform_5(%arg0: i32) -> (i32, i32, i32) {
    %c0_i32 = arith.constant 0 : i32
    %c0_i32_0 = arith.constant 0 : i32
    %c0_i32_1 = arith.constant 0 : i32
    return %arg0, %c0_i32, %c0_i32_0 : i32, i32, i32
  }
  func.func @transform_6(%arg0: i32) -> (i32, i32, i32) {
    %c0_i32 = arith.constant 0 : i32
    %c0_i32_0 = arith.constant 0 : i32
    %c0_i32_1 = arith.constant 0 : i32
    return %arg0, %c0_i32, %c0_i32_0 : i32, i32, i32
  }
  func.func @transform_7(%arg0: i32) -> (i32, i32, i32) {
    %c0_i32 = arith.constant 0 : i32
    %c0_i32_0 = arith.constant 0 : i32
    %c0_i32_1 = arith.constant 0 : i32
    return %arg0, %c0_i32, %c0_i32_0 : i32, i32, i32
  }
  func.func @transform_8(%arg0: i32) -> (i32, i32, i32) {
    %c0_i32 = arith.constant 0 : i32
    %c0_i32_0 = arith.constant 0 : i32
    %c0_i32_1 = arith.constant 0 : i32
    return %arg0, %c0_i32, %c0_i32_0 : i32, i32, i32
  }
  func.func @transform_9(%arg0: i32) -> (i32, i32) {
    %c0_i32 = arith.constant 0 : i32
    %c0_i32_0 = arith.constant 0 : i32
    %c0_i32_1 = arith.constant 0 : i32
    return %c0_i32, %c0_i32_0 : i32, i32
  }
  func.func @transform_10(%arg0: i32) -> (i32, i32) {
    %c0_i32 = arith.constant 0 : i32
    %c0_i32_0 = arith.constant 0 : i32
    %c0_i32_1 = arith.constant 0 : i32
    return %c0_i32, %c0_i32_0 : i32, i32
  }
  func.func @transform_11(%arg0: i32) -> (i32, i32) {
    %c0_i32 = arith.constant 0 : i32
    %c0_i32_0 = arith.constant 0 : i32
    %c0_i32_1 = arith.constant 0 : i32
    return %c0_i32, %c0_i32_0 : i32, i32
  }
  func.func @transform_12(%arg0: i32) -> (i32, i32) {
    %c0_i32 = arith.constant 0 : i32
    %c0_i32_0 = arith.constant 0 : i32
    %c0_i32_1 = arith.constant 0 : i32
    return %c0_i32, %c0_i32_0 : i32, i32
  }
  func.func @transform_13(%arg0: i32) -> (i32, i32) {
    %c0_i32 = arith.constant 0 : i32
    %c0_i32_0 = arith.constant 0 : i32
    %c0_i32_1 = arith.constant 0 : i32
    return %c0_i32, %c0_i32_0 : i32, i32
  }
  func.func @transform_14(%arg0: i32) -> (i32, i32, i32, i32, i32) {
    %c0_i32 = arith.constant 0 : i32
    %c0_i32_0 = arith.constant 0 : i32
    %c0_i32_1 = arith.constant 0 : i32
    %c0_i32_2 = arith.constant 0 : i32
    %c0_i32_3 = arith.constant 0 : i32
    return %arg0, %c0_i32, %c0_i32_0, %c0_i32_1, %c0_i32_2 : i32, i32, i32, i32, i32
  }
}

</mosaic_0001>

<bundles_post_ra>
// kernel: tpu_custom_call.1
= control target key start
LH: loop header
LB: loop body
LE: loop exit
PB: predicated region body
PF: predicated region fallthrough
CT: control target
= control target key end

     0   :  { %s3810_s0 = inlined_call_operand.vmem [shape: bf16[16,48], index: 0, kind: input, shape index: {}]   ;;  %s3811_s1 = inlined_call_operand.vmem [shape: bf16[48,32], index: 1, kind: input, shape index: {}]   ;;  %s3812_s2 = inlined_call_operand.vmem [shape: f32[1,32], index: 2, kind: input, shape index: {}]   ;;  %s3813_s3 = inlined_call_operand.vmem [shape: f32[1,32], index: 3, kind: input, shape index: {}]   ;;  %s3814_s4 = inlined_call_operand.vmem [shape: f32[9,32], index: 4, kind: input, shape index: {}]   ;;  %s3815_s5 = inlined_call_operand.vmem [shape: f32[2,1,384], index: 5, kind: input, shape index: {}]   ;;  %s3816_s6 = inlined_call_operand.vmem [shape: bf16[2,32,96], index: 6, kind: input, shape index: {}]   ;;  %s3817_s7 = inlined_call_operand.vmem [shape: bf16[2,32,64], index: 7, kind: input, shape index: {}]   ;;  %s3818_s8 = inlined_call_operand.vmem [shape: bf16[2,64,32], index: 8, kind: input, shape index: {}]   ;;  %s3819_s9 = inlined_call_operand.vmem [shape: f32[1,32], index: 9, kind: input, shape index: {}]   ;;  %s3820_s10 = inlined_call_operand.vmem [shape: f32[1,32], index: 10, kind: input, shape index: {}]   ;;  %s3821_s11 = inlined_call_operand.vmem [shape: bf16[32,10], index: 11, kind: input, shape index: {}]   ;;  %s3822_s12 = inlined_call_operand.vmem [shape: f32[1,10], index: 12, kind: input, shape index: {}]   ;;  %s3823_s13 = inlined_call_operand.hbm [shape: f32[2,10], index: 13, kind: output, shape index: {0}]   ;;  %s3824_s14 = inlined_call_operand.vmem [shape: bf16[2,2,4,9,128], index: 14, kind: output, shape index: {1}]  }
   0x1   :  { %3827 = sst [smem:[#allocation8_spill]] %s3816_s6 }
   0x2   :  { %3828 = sst [smem:[#allocation9_spill]] %s3822_s12 }
   0x3   :  { %3829 = sst [smem:[#allocation10_spill]] %s3823_s13 }
   0x4   :  { %20 = vsyncpa [#allocation5], 0  ;;  %s3232_s29 = smov 0  }
   0x5 LB: > { %3830 = sst [smem:[#allocation7_spill]] %s3131_s29  ;;  %s3238_s30 = sadd.s32 4294967295, %s3131_s29   ;;  %s3131_s29 = sphi %s3232_s29, %s26_s29  }
   0x6   : > { %p2634_p0 = scmp.ge.s32.totalorder %s3131_s29, 1  ;;  %p440_p1 = scmp.lt.s32.totalorder %s3131_s29, 3 }
   0x8   : > { %p441_p2 = pnand %p2634_p0, %p440_p1 }
   0x9   : > { %p500_p3 = scmp.lt.s32.totalorder (!%p441_p2), %s3238_s30, 1  ;;  %s3831_s6 = sld [smem:[#allocation8_spill]] (!%p441_p2) }
   0xa   : > { %444 = sbr.rel (%p441_p2) target bundleno = 3311 (0xcef), region = 72  ;;  %p2643_p4 = scmp.ne.s32.totalorder (!%p441_p2), %s3238_s30, 0 }
  0x11   : > { %s501_s15 = scalar_select %p500_p3, %s3238_s30, 1 }
  0x12   : > { %528 = sbr.rel (%p2643_p4) target bundleno = 250 (0xfa), region = 76  ;;  %v2983_v0 = vld [vmem:[%s3811_s1] sm:$0xff] (!%p2643_p4)   ;;  %v3133_v1 = vmov (!%p2643_p4), 0.0   ;;  %v2984_v2 = vld [vmem:[%s3811_s1 + $0x8] sm:$0xff] (!%p2643_p4)   ;;  %vm3134_vm0 = vmmov (!%p2643_p4), 0   ;;  %v2985_v3 = vld [vmem:[%s3811_s1 + $0x10] sm:$0xff] (!%p2643_p4)  }
  0x13   : > { %s2944_s16 = smul.u32 3, %s501_s15  ;;  %s2742_s17 = sshll.u32 %s501_s15, 4  ;;  %2802 = vmatprep.subr.bf16.mxu0 (!%p2643_p4), %v3133_v1  ;;  %2808 = vmatprep.mubr.msk.bf16.mxu0 (!%p2643_p4), %vm3134_vm0, %v3133_v1  ;;  %v2986_v4 = vld [vmem:[%s3810_s0] sm:$0xff] (!%p2643_p4)   ;;  %vm567_vm1 = vcmask (!%p2643_p4), 392192   ;;  %vm615_vm2 = vcmask (!%p2643_p4), 253952   ;;  %vm619_vm3 = vcmask (!%p2643_p4), 261120  }
  0x14   : > { %s3247_s20 = scalar_lea.vmem %s3831_s6, %s2742_s17  ;;  %s3252_s23 = scalar_lea.vmem %s3817_s7, %s2742_s17  ;;  %2803 = vmatpush3.bf16.msra.mxu0 (!%p2643_p4), %v2983_v0  ;;  %v612_v5 = vld [vmem:[%s3813_s3] sm:$0x1] (!%p2643_p4)  ;;  %v617_v13 = vld [vmem:[%s3814_s4 + $0x1] sm:$0xff] (!%p2643_p4) }
  0x15   : > { %s3257_s26 = scalar_lea.vmem %s3815_s5, %s2944_s16  ;;  %s2744_s27 = sshll.u32 %s501_s15, 5  ;;  %2804 = vmatprep.subr.bf16.mxu0 (!%p2643_p4), %v3133_v1  ;;  %v613_v6 = vld [vmem:[%s3814_s4] sm:$0x1] (!%p2643_p4) }
  0x16   : > { %s3262_s13 = scalar_lea.vmem %s3818_s8, %s2744_s27  ;;  %s2745_s12 = sshll.u32 %s501_s15, 6  ;;  %v621_v7 = vld [vmem:[%s3813_s3] sm:$0x1] (!%p2643_p4)  ;;  %v614_v8 = vadd.f32 (!%p2643_p4), %v613_v6, %v612_v5 }
  0x17   : > { %s3267_s6 = scalar_lea.vmem %s3824_s14, %s2745_s12  ;;  %v622_v9 = vld [vmem:[%s3814_s4] sm:$0x1] (!%p2643_p4) }
  0x18   : > { %2805 = vmatpush3.bf16.msra.mxu0 (!%p2643_p4), %v2984_v2  ;;  %v623_v10 = vadd.f32 (!%p2643_p4), %v622_v9, %v621_v7  ;;  %616 = vst.msk [vmem:[#allocation2] sm:$0x1] (!%p2643_p4), %vm615_vm2, %v614_v8  ;;  %v2644_v11 = vld [vmem:[%s3812_s2] ss:$0 sm:$0xff] (!%p2643_p4) }
  0x19   : > { %2806 = vmatprep.subr.bf16.mxu0 %v3133_v1 }
  0x1a   : > { %624 = vst.msk [vmem:[#allocation2 + $0x9] sm:$0x1] %vm615_vm2, %v623_v10 }
  0x1c   : > { %2807 = vmatpush3.bf16.msra.mxu0 %v2985_v3 }
  0x1f   : > { %2809 = vmatmul.mubr.msk.bf16.vlgmr.msra.gmra.mrb[0].mxu0 %vm567_vm1, %v2986_v4 }
  0xf2   : > { %v605_v12 = vpop.f32.mrb[0].mxu0 }
  0xf3   : > { %v606_v14 = vadd.f32 %v2644_v11, %v605_v12  ;;  %v2810_v15 = vpop.f32.mrb[1].mxu0 }
  0xf4   : > { %v608_v16 = vpop.f32.mrb[2].mxu0 }
  0xf5   : > { %v618_v17 = vadd.f32 %v617_v13, %v606_v14  ;;  %v609_v18 = vadd.f32 %v2644_v11, %v608_v16  ;;  %v2811_v19 = vpop.f32.mrb[3].mxu0 }
  0xf7   : > { %620 = vst.msk [vmem:[#allocation2 + $0x1] sm:$0xff] %vm619_vm3, %v618_v17  ;;  %v626_v20 = vadd.f32 %v617_v13, %v609_v18 }
  0xf9   : > { %627 = vst.msk [vmem:[#allocation2 + $0xa] sm:$0xff] %vm619_vm3, %v626_v20 }
  0xfa PF: > { %vm652_vm4 = vcmask 261120   ;;  %vm659_vm5 = vcmask 254976   ;;  %v2650_v42 = vld [vmem:[%s3257_s26] ss:$0 sm:$0xff]  ;;  %s3135_s24 = smov 96   ;;  %v2988_v44 = vld [vmem:[%s3247_s20 + $0x8] sm:$0xff]   ;;  %v712_v45 = vlaneseq }
  0xfb   : > { %v2987_v43 = vld [vmem:[%s3247_s20] sm:$0xff]   ;;  %s3136_s25 = smov 64   ;;  %vm736_vm6 = vcmask 523264   ;;  %vm809_vm7 = vcmask 778240   ;;  %vm806_vm8 = vcmask 781312   ;;  %vm3138_vm9 = vmmov 0  }
  0xfc   : > { %2812 = vmatprep.subr.bf16.mxu1 %v2987_v43  ;;  %v3310_v46 = vshrl.u32 %v712_v45, 7  ;;  %v629_v47 = vld [vmem:[%s3257_s26] sm:$0x3]  ;;  %s3139_s20 = smov 88   ;;  %s3140_s27 = smov 80   ;;  %vm820_vm10 = vcmask 64512  }
  0xfd   : > { %2813 = vmatpush3.bf16.msra.mxu1 %v2987_v43  ;;  %s3141_s28 = smov 120   ;;  %s3142_s18 = smov 72   ;;  %vm914_vm11 = vcmask 1043456   ;;  %vm915_vm12 = vcmask 1044480   ;;  %vm868_vm13 = vcmask 72704   ;;  %vm872_vm14 = vcmask 65536  }
  0xfe   : > { %2814 = vmatprep.subr.bf16.mxu1 %v2988_v44  ;;  %v714_v48 = vsub.s32 0, %v3310_v46  ;;  %v718_v49 = vsub.s32 1, %v3310_v46  ;;  %s3143_s19 = smov 112   ;;  %s3144_s17 = smov 104   ;;  %vm904_vm15 = vcmask 1040384   ;;  %vm967_vm2 = vcmask 57344  }
  0xff   : > { %s3146_s21 = smov 48   ;;  %s3147_s16 = smov 56   ;;  %vm905_vm0 = vsmask.f32 256  ;;  %vm1124_vm3 = vcmask 130112  }
 0x100   : > { %v649_v21 = vld [vmem:[#allocation2] sm:$0xff]  ;;  %v651_v22 = vld [vmem:[#allocation2 + $0x10] sm:$0x3]  ;;  %v650_v23 = vld [vmem:[#allocation2 + $0x8] sm:$0xff]  ;;  %v715_v50 = vrot.slane %v629_v47, %v714_v48  ;;  %v719_v51 = vrot.slane %v629_v47, %v718_v49  ;;  %s3148_s29 = smov 40   ;;  %s3149_s12 = smov 8  }
 0x101   : > { %v653_v24 = vsel %vm652_vm4, %v649_v21, 0.0  ;;  %v660_v25 = vsel %vm659_vm5, %v651_v22, 0.0  ;;  %v656_v26 = vsel %vm652_vm4, %v650_v23, 0.0  ;;  %2815 = vmatpush3.bf16.msra.mxu1 %v2988_v44  ;;  %vm3576_vm1 = vmand %vm904_vm15, %vm905_vm0  ;;  %s3151_s15 = smov 24   ;;  %s3152_s22 = smov 32  }
 0x102   : > { %654 = vadd.xlane.f32.xlu0 %v653_v24  ;;  %661 = vadd.xlane.f32.xlu1 %v660_v25  ;;  %v3137_v25 = vmov 0.0   ;;  %p2731_p5 = scmp.ne.s32.totalorder %s3238_s30, 1 }
 0x103   : > { %2820 = vmatprep.subr.bf16.mxu1 %v3137_v25  ;;  %2826 = vmatprep.subr.bf16.mxu0 %v3137_v25 }
 0x104   : > { %2828 = vmatprep.mubr.msk.bf16.mxu0 %vm3138_vm9, %v3137_v25 }
 0x106   : > { %657 = vadd.xlane.f32.xlu0 %v656_v26 }
 0x18f   : > { %v655_v27 = vpop.xlane.xlu0 %654  ;;  %v662_v28 = vpop.xlane.xlu1 %661 }
 0x190   : > { %v664_v29 = vmul.f32 0.03125, %v655_v27  ;;  %v666_v30 = vmul.f32 0.03125, %v662_v28 }
 0x192   : > { %v667_v31 = vsub.f32 %v649_v21, %v664_v29  ;;  %v669_v32 = vsub.f32 %v651_v22, %v666_v30 }
 0x193   : > { %v658_v33 = vpop.xlane.xlu0 %657 }
 0x194   : > { %v665_v34 = vmul.f32 0.03125, %v658_v33  ;;  %v670_v35 = vmul.f32 %v667_v31, %v667_v31  ;;  %v672_v36 = vmul.f32 %v669_v32, %v669_v32 }
 0x196   : > { %v668_v37 = vsub.f32 %v650_v23, %v665_v34  ;;  %v673_v38 = vsel %vm652_vm4, %v670_v35, 0.0  ;;  %v679_v39 = vsel %vm659_vm5, %v672_v36, 0.0 }
 0x197   : > { %674 = vadd.xlane.f32.xlu1 %v673_v38 }
 0x198   : > { %v671_v40 = vmul.f32 %v668_v37, %v668_v37 }
 0x19a   : > { %v676_v41 = vsel %vm652_vm4, %v671_v40, 0.0 }
 0x19b   : > { %680 = vadd.xlane.f32.xlu1 %v679_v39  ;;  %677 = vadd.xlane.f32.xlu0 %v676_v41 }
 0x1ac   : > { %732 = vrot.lane.b32.xlu1 %v715_v50, %s3136_s25 }
 0x1b0   : > { %734 = vrot.lane.b32.xlu1 %v719_v51, %s3136_s25 }
 0x1b1   : > { %703 = vrot.lane.b32.xlu0 %v2650_v42, %s3135_s24 }
 0x224   : > { %v675_v52 = vpop.xlane.xlu1 %674 }
 0x225   : > { %v682_v53 = vmul.f32 0.03125, %v675_v52 }
 0x227   : > { %v685_v54 = vadd.f32 1e-05, %v682_v53 }
 0x228   : > { %v681_v55 = vpop.xlane.xlu1 %680  ;;  %v678_v56 = vpop.xlane.xlu0 %677 }
 0x229   : > { %3003 = vrsqrt.f32 %v685_v54  ;;  %v684_v57 = vmul.f32 0.03125, %v681_v55  ;;  %v683_v58 = vmul.f32 0.03125, %v678_v56 }
 0x22b   : > { %v687_v59 = vadd.f32 1e-05, %v684_v57  ;;  %v686_v60 = vadd.f32 1e-05, %v683_v58 }
 0x22c   : > { %v704_v4 = vpop.permute.xlu0 %703  ;;  %v733_v12 = vpop.permute.xlu1 %732 }
 0x22d   : > { %3005 = vrsqrt.f32 %v687_v59 }
 0x22e   : > { %3007 = vrsqrt.f32 %v686_v60 }
 0x230   : > { %v735_v13 = vpop.permute.xlu1 %734 }
 0x231   : > { %v737_v14 = vsel %vm736_vm6, %v733_v12, %v735_v13 }
 0x233   : > { %v3004_v61 = vpop.eup %3003 }
 0x234   : > { %v691_v62 = vmul.f32 %v3004_v61, %v667_v31 }
 0x236   : > { %v700_v3 = vmul.f32 %v2650_v42, %v691_v62 }
 0x237   : > { %v3006_v63 = vpop.eup %3005 }
 0x238   : > { %v3008_v0 = vpop.eup %3007  ;;  %v693_v1 = vmul.f32 %v3006_v63, %v669_v32  ;;  %v706_v8 = vadd.f32 %v704_v4, %v700_v3 }
 0x239   : > { %v692_v2 = vmul.f32 %v3008_v0, %v668_v37 }
 0x23a   : > { %v702_v5 = vmul.f32 %v2650_v42, %v693_v1  ;;  %v3145_v1 = vmov 65535  }
 0x23b   : > { %v701_v6 = vmul.f32 %v2650_v42, %v692_v2  ;;  %v916_v2 = vsel %vm914_vm11, 4294967295, %v3145_v1  ;;  %vm1444_vm11 = vcmask 254144  }
 0x23c   : > { %v708_v7 = vadd.f32 %v704_v4, %v702_v5  ;;  %v3378_v5 = vsel %vm915_vm12, %v916_v2, 0 }
 0x23d   : > { %v707_v9 = vadd.f32 %v704_v4, %v701_v6 }
 0x23e   : > { %v710_v10 = vpack.c.bf16 %v708_v7, %v708_v7 }
 0x23f   : > { %v709_v11 = vpack.c.bf16 %v707_v9, %v706_v8 }
 0x241   : > { %2816 = vmatprep.mubr.msk.bf16.mxu1 %vm652_vm4, %v709_v11 }
 0x242   : > { %2817 = vmatmul.mubr.msk.bf16.vlgmr.msra.gmra.mrb[0].mxu1 %vm652_vm4, %v710_v10 }
 0x243   : > { %2822 = vmatprep.mubr.msk.bf16.mxu1 %vm3138_vm9, %v3137_v25 }
 0x315   : > { %v2818_v15 = vpop.f32.mrb[0].mxu1 }
 0x316   : > { %v788_v16 = vadd.f32 %v2818_v15, %v737_v14  ;;  %v779_v17 = vpop.f32.mrb[1].mxu1 }
 0x317   : > { %v780_v18 = vadd.f32 %v779_v17, %v737_v14  ;;  %v2819_v19 = vpop.f32.mrb[2].mxu1 }
 0x318   : > { %v2748_v20 = vpack.c.bf16 %v788_v16, %v788_v16  ;;  %v782_v21 = vpop.f32.mrb[3].mxu1 }
 0x319   : > { %v2746_v22 = vpack.c.bf16 %v780_v18, %v780_v18  ;;  %v783_v23 = vadd.f32 %v782_v21, %v737_v14 }
 0x31a   : > { %810 = vst.msk [vmem:[#allocation3 + $0x8] sm:$0x1] %vm809_vm7, %v2748_v20  ;;  %vm1126_vm7 = vcmask 122944  }
 0x31b   : > { %807 = vst.msk [vmem:[#allocation3] sm:$0xf] %vm806_vm8, %v2746_v22  ;;  %v2747_v24 = vpack.c.bf16 %v783_v23, %v783_v23 }
 0x31d   : > { %808 = vst.msk [vmem:[#allocation3 + $0x4] sm:$0xf] %vm806_vm8, %v2747_v24  ;;  %vm1285_vm8 = vcmask 188544  }
 0x324   : > { %v3330_v26 = vld [vmem:[#allocation3] sm:$0x1f]  }
 0x325   : > { %v2990_v27 = vld [vmem:[#allocation3] sm:$0x1f]   ;;  %978 = vrot.lane.b32.xlu0 %v3330_v26, %s3139_s20 }
 0x326   : > { %818 = vrot.lane.b32.xlu1 %v2990_v27, %s3135_s24  ;;  %v3335_v28 = vld [vmem:[#allocation3] sm:$0x1f]  }
 0x327   : > { %v2993_v29 = vld [vmem:[#allocation3 + $0x4] sm:$0x1f]  }
 0x328   : > { %v2994_v30 = vld [vmem:[#allocation3 + $0x4] sm:$0x1f]   ;;  %v1456_v31 = vshll.u32 %v2993_v29, 16  ;;  %v1454_v36 = vshrl.u32 %v2993_v29, 16 }
 0x329   : > { %1137 = vrot.lane.b32.xlu0 %v3335_v28, %s3140_s27  ;;  %v3340_v32 = vld [vmem:[#allocation3] sm:$0x1f]   ;;  %v1610_v34 = vshll.u32 %v2994_v30, 16  ;;  %v1608_v41 = vshrl.u32 %v2994_v30, 16 }
 0x32a   : > { %976 = vrot.lane.b32.xlu1 %v3330_v26, %s3141_s28  ;;  %v1458_v33 = vrot.slane %v1456_v31, 1  ;;  %v2995_v35 = vld [vmem:[#allocation3 + $0x4] sm:$0x1f]  }
 0x32b   : > { %v1612_v38 = vrot.slane %v1610_v34, 1  ;;  %v1774_v39 = vshll.u32 %v2995_v35, 16  ;;  %v2996_v40 = vld [vmem:[#allocation3 + $0x4] sm:$0x1f]   ;;  %v1772_v45 = vshrl.u32 %v2995_v35, 16 }
 0x32c   : > { %v3344_v37 = vor.u32 %v1458_v33, %v1454_v36  ;;  %v1938_v44 = vshll.u32 %v2996_v40, 16  ;;  %v1936_v51 = vshrl.u32 %v2996_v40, 16 }
 0x32d   : > { %1296 = vrot.lane.b32.xlu0 %v3340_v32, %s3142_s18  ;;  %v3349_v42 = vor.u32 %v1612_v38, %v1608_v41  ;;  %v1776_v43 = vrot.slane %v1774_v39, 1 }
 0x32e   : > { %1135 = vrot.lane.b32.xlu1 %v3335_v28, %s3143_s19  ;;  %v1940_v50 = vrot.slane %v1938_v44, 1 }
 0x32f   : > { %v3354_v47 = vor.u32 %v1776_v43, %v1772_v45 }
 0x330   : > { %v3359_v52 = vor.u32 %v1940_v50, %v1936_v51 }
 0x331   : > { %1460 = vrot.lane.b32.xlu0 %v3344_v37, %s3135_s24 }
 0x332   : > { %1294 = vrot.lane.b32.xlu1 %v3340_v32, %s3144_s17 }
 0x335   : > { %1614 = vrot.lane.b32.xlu0 %v3349_v42, %s3141_s28 }
 0x336   : > { %1616 = vrot.lane.b32.xlu1 %v3349_v42, %s3139_s20 }
 0x339   : > { %1778 = vrot.lane.b32.xlu0 %v3354_v47, %s3143_s19 }
 0x33a   : > { %1780 = vrot.lane.b32.xlu1 %v3354_v47, %s3140_s27 }
 0x33d   : > { %1942 = vrot.lane.b32.xlu0 %v3359_v52, %s3144_s17  ;;  %s3834_s17 = sld [smem:[#allocation9_spill]] (!%p2731_p5) }
 0x33e   : > { %1944 = vrot.lane.b32.xlu1 %v3359_v52, %s3142_s18 }
 0x342   : > { %910 = vrot.lane.b32.xlu1 %v2990_v27, %s3136_s25 }
 0x397   : > { %v979_v56 = vpop.permute.xlu0 %978 }
 0x398   : > { %v819_v53 = vpop.permute.xlu1 %818  ;;  %v984_v58 = vsel %vm820_vm10, %v979_v56, 0 }
 0x399   : > { %v825_v54 = vsel %vm820_vm10, %v819_v53, 0 }
 0x39a   : > { %2821 = vmatpush3.bf16.xpose.msra.mxu1 %v825_v54 }
 0x39b   : > { %2832 = vmatprep.subr.bf16.mxu1 %v3137_v25  ;;  %v1138_v60 = vpop.permute.xlu0 %1137 }
 0x39c   : > { %v977_v55 = vpop.permute.xlu1 %976  ;;  %v1143_v62 = vsel %vm820_vm10, %v1138_v60, 0 }
 0x39f   : > { %v1297_v0 = vpop.permute.xlu0 %1296 }
 0x3a0   : > { %v1136_v57 = vpop.permute.xlu1 %1135  ;;  %v1302_v4 = vsel %vm820_vm10, %v1297_v0, 0 }
 0x3a1   : > { %2823 = vmatmul.mubr.msk.bf16.vlgmr.msra.gmra.mrb[4].mxu1 %vm820_vm10, %v2990_v27 }
 0x3a2   : > { %2833 = vmatpush3.bf16.xpose.msra.mxu1 %v984_v58  ;;  %2834 = vmatprep.mubr.msk.bf16.mxu1 %vm3138_vm9, %v3137_v25 }
 0x3a3   : > { %2844 = vmatprep.subr.bf16.mxu1 %v3137_v25  ;;  %v1461_v8 = vpop.permute.xlu0 %1460 }
 0x3a4   : > { %v1295_v59 = vpop.permute.xlu1 %1294  ;;  %v1466_v9 = vsel %vm820_vm10, %v1461_v8, 0 }
 0x3a7   : > { %v1615_v11 = vpop.permute.xlu0 %1614 }
 0x3a8   : > { %v1617_v61 = vpop.permute.xlu1 %1616 }
 0x3a9   : > { %2835 = vmatmul.mubr.msk.bf16.vlgmr.msra.gmra.mrb[8].mxu1 %vm820_vm10, %v977_v55  ;;  %v1622_v10 = vsel %vm820_vm10, %v1617_v61, 0 }
 0x3aa   : > { %2845 = vmatpush3.bf16.xpose.msra.mxu1 %v1143_v62  ;;  %2846 = vmatprep.mubr.msk.bf16.mxu1 %vm3138_vm9, %v3137_v25 }
 0x3ab   : > { %2856 = vmatprep.subr.bf16.mxu1 %v3137_v25  ;;  %v1779_v13 = vpop.permute.xlu0 %1778 }
 0x3ac   : > { %v1781_v63 = vpop.permute.xlu1 %1780 }
 0x3ad   : > { %v1786_v12 = vsel %vm820_vm10, %v1781_v63, 0 }
 0x3af   : > { %v1943_v15 = vpop.permute.xlu0 %1942 }
 0x3b0   : > { %v1945_v3 = vpop.permute.xlu1 %1944 }
 0x3b1   : > { %2847 = vmatmul.mubr.msk.bf16.vlgmr.msra.gmra.mrb[12].mxu1 %vm820_vm10, %v1136_v57  ;;  %v1950_v14 = vsel %vm820_vm10, %v1945_v3, 0 }
 0x3b2   : > { %2857 = vmatpush3.bf16.xpose.msra.mxu1 %v1302_v4  ;;  %2858 = vmatprep.mubr.msk.bf16.mxu1 %vm3138_vm9, %v3137_v25 }
 0x3b3   : > { %2868 = vmatprep.subr.bf16.mxu1 %v3137_v25 }
 0x3b4   : > { %v911_v6 = vpop.permute.xlu1 %910 }
 0x3b5   : > { %v919_v7 = vand.u32 %v3378_v5, %v911_v6 }
 0x3b7   : > { %2827 = vmatpush3.bf16.msra.mxu0 %v919_v7 }
 0x3b8   : > { %2838 = vmatprep.subr.bf16.mxu0 %v3137_v25 }
 0x3b9   : > { %2859 = vmatmul.mubr.msk.bf16.vlgmr.msra.gmra.mrb[16].mxu1 %vm820_vm10, %v1295_v59 }
 0x3ba   : > { %2869 = vmatpush3.bf16.xpose.msra.mxu1 %v1466_v9  ;;  %2870 = vmatprep.mubr.msk.bf16.mxu1 %vm3138_vm9, %v3137_v25 }
 0x3bb   : > { %2880 = vmatprep.subr.bf16.mxu1 %v3137_v25 }
 0x3c1   : > { %2871 = vmatmul.mubr.msk.bf16.vlgmr.msra.gmra.mrb[20].mxu1 %vm820_vm10, %v3344_v37 }
 0x3c2   : > { %2881 = vmatpush3.bf16.xpose.msra.mxu1 %v1622_v10  ;;  %2882 = vmatprep.mubr.msk.bf16.mxu1 %vm3138_vm9, %v3137_v25 }
 0x3c3   : > { %2892 = vmatprep.subr.bf16.mxu1 %v3137_v25 }
 0x3c9   : > { %2883 = vmatmul.mubr.msk.bf16.vlgmr.msra.gmra.mrb[24].mxu1 %vm820_vm10, %v1615_v11 }
 0x3ca   : > { %2893 = vmatpush3.bf16.xpose.msra.mxu1 %v1786_v12  ;;  %2894 = vmatprep.mubr.msk.bf16.mxu1 %vm3138_vm9, %v3137_v25 }
 0x3cb   : > { %2904 = vmatprep.subr.bf16.mxu1 %v3137_v25 }
 0x3d1   : > { %2895 = vmatmul.mubr.msk.bf16.vlgmr.msra.gmra.mrb[28].mxu1 %vm820_vm10, %v1779_v13 }
 0x3d2   : > { %2905 = vmatpush3.bf16.xpose.msra.mxu1 %v1950_v14  ;;  %2906 = vmatprep.mubr.msk.bf16.mxu1 %vm3138_vm9, %v3137_v25 }
 0x3d9   : > { %2907 = vmatmul.mubr.msk.bf16.vlgmr.msra.gmra.mrb[32].mxu1 %vm820_vm10, %v1943_v15 }
 0x474   : > { %v3406_v16 = vpop.f32.mrb[4].mxu1 }
 0x475   : > { %v2824_v17 = vpop.f32.mrb[5].mxu1  ;;  %v869_v18 = vsel %vm868_vm13, %v3406_v16, -inf }
 0x476   : > { %870 = vmax.xlane.f32.xlu1 %v869_v18  ;;  %v3410_v19 = vpop.f32.mrb[6].mxu1 }
 0x477   : > { %v2825_v20 = vpop.f32.mrb[7].mxu1  ;;  %v873_v21 = vsel %vm872_vm14, %v3410_v19, -inf }
 0x478   : > { %874 = vmax.xlane.f32.xlu0 %v873_v21 }
 0x47c   : > { %v3414_v22 = vpop.f32.mrb[8].mxu1 }
 0x47d   : > { %v2836_v23 = vpop.f32.mrb[9].mxu1  ;;  %v1027_v24 = vsel %vm868_vm13, %v3414_v22, -inf }
 0x47e   : > { %1028 = vmax.xlane.f32.xlu0 %v1027_v24  ;;  %v3418_v27 = vpop.f32.mrb[10].mxu1 }
 0x47f   : > { %v2837_v29 = vpop.f32.mrb[11].mxu1  ;;  %v1030_v30 = vsel %vm872_vm14, %v3418_v27, -inf }
 0x482   : > { %1031 = vmax.xlane.f32.xlu0 %v1030_v30 }
 0x484   : > { %v3422_v31 = vpop.f32.mrb[12].mxu1 }
 0x485   : > { %v2848_v33 = vpop.f32.mrb[13].mxu1  ;;  %v1186_v34 = vsel %vm868_vm13, %v3422_v31, -inf }
 0x486   : > { %1187 = vmax.xlane.f32.xlu1 %v1186_v34  ;;  %v3426_v35 = vpop.f32.mrb[14].mxu1 }
 0x487   : > { %v2849_v36 = vpop.f32.mrb[15].mxu1  ;;  %v1189_v38 = vsel %vm872_vm14, %v3426_v35, -inf }
 0x488   : > { %1190 = vmax.xlane.f32.xlu0 %v1189_v38 }
 0x48c   : > { %v3430_v39 = vpop.f32.mrb[16].mxu1 }
 0x48d   : > { %v2860_v40 = vpop.f32.mrb[17].mxu1  ;;  %v1345_v41 = vsel %vm868_vm13, %v3430_v39, -inf }
 0x48e   : > { %1346 = vmax.xlane.f32.xlu1 %v1345_v41  ;;  %v3434_v43 = vpop.f32.mrb[18].mxu1 }
 0x48f   : > { %v2861_v44 = vpop.f32.mrb[19].mxu1  ;;  %v1348_v45 = vsel %vm872_vm14, %v3434_v43, -inf }
 0x490   : > { %1349 = vmax.xlane.f32.xlu0 %v1348_v45 }
 0x494   : > { %v3438_v50 = vpop.f32.mrb[20].mxu1 }
 0x495   : > { %v2872_v51 = vpop.f32.mrb[21].mxu1 }
 0x496   : > { %v3440_v53 = vpop.f32.mrb[22].mxu1 }
 0x497   : > { %v2873_v54 = vpop.f32.mrb[23].mxu1  ;;  %v1512_v3 = vsel %vm872_vm14, %v3440_v53, -inf }
 0x49c   : > { %v3442_v55 = vpop.f32.mrb[24].mxu1 }
 0x49d   : > { %v2884_v56 = vpop.f32.mrb[25].mxu1 }
 0x49e   : > { %v3444_v57 = vpop.f32.mrb[26].mxu1 }
 0x49f   : > { %1223 = vrot.lane.b32.xlu1 %v3335_v28, %s3146_s21  ;;  %v2885_v58 = vpop.f32.mrb[27].mxu1  ;;  %v1509_v28 = vsel %vm868_vm13, %v3438_v50, -inf  ;;  %v1668_v4 = vsel %vm872_vm14, %v3444_v57, -inf }
 0x4a4   : > { %v3448_v59 = vpop.f32.mrb[28].mxu1 }
 0x4a5   : > { %v2896_v60 = vpop.f32.mrb[29].mxu1  ;;  %v1829_v6 = vsel %vm868_vm13, %v3448_v59, -inf }
 0x4a6   : > { %1064 = vrot.lane.b32.xlu0 %v3330_v26, %s3147_s16  ;;  %v3452_v61 = vpop.f32.mrb[30].mxu1  ;;  %v1665_v26 = vsel %vm868_vm13, %v3442_v55, -inf }
 0x4a7   : > { %v2897_v62 = vpop.f32.mrb[31].mxu1  ;;  %v1832_v7 = vsel %vm872_vm14, %v3452_v61, -inf }
 0x4ac   : > { %v3454_v63 = vpop.f32.mrb[32].mxu1 }
 0x4ad   : > { %v2908_v0 = vpop.f32.mrb[33].mxu1  ;;  %v1993_v8 = vsel %vm868_vm13, %v3454_v63, -inf }
 0x4ae   : > { %v3456_v1 = vpop.f32.mrb[34].mxu1 }
 0x4af   : > { %v2909_v2 = vpop.f32.mrb[35].mxu1  ;;  %v1996_v9 = vsel %vm872_vm14, %v3456_v1, -inf }
 0x4c3   : > { %1510 = vmax.xlane.f32.xlu1 %v1509_v28 }
 0x4c5   : > { %1513 = vmax.xlane.f32.xlu0 %v1512_v3 }
 0x4c7   : > { %1666 = vmax.xlane.f32.xlu1 %v1665_v26 }
 0x4c9   : > { %1669 = vmax.xlane.f32.xlu0 %v1668_v4 }
 0x4cb   : > { %1830 = vmax.xlane.f32.xlu1 %v1829_v6 }
 0x4cd   : > { %1833 = vmax.xlane.f32.xlu0 %v1832_v7 }
 0x4cf   : > { %1994 = vmax.xlane.f32.xlu1 %v1993_v8 }
 0x4d1   : > { %1997 = vmax.xlane.f32.xlu0 %v1996_v9 }
 0x4e0   : > { %1382 = vrot.lane.b32.xlu1 %v3340_v32, %s3148_s29 }
 0x503   : > { %v871_v10 = vpop.xlane.xlu1 %870 }
 0x504   : > { %v876_v11 = vsub.f32 %v3406_v16, %v871_v10 }
 0x505   : > { %v875_v12 = vpop.xlane.xlu0 %874 }
 0x506   : > { %v878_v13 = vmul.f32 1.442695, %v876_v11  ;;  %v877_v14 = vsub.f32 %v3410_v19, %v875_v12 }
 0x508   : > { %3009 = vpow2.f32 %v878_v13  ;;  %v880_v15 = vmul.f32 1.442695, %v877_v14 }
 0x50a   : > { %3011 = vpow2.f32 %v880_v15 }
 0x50b   : > { %v1029_v17 = vpop.xlane.xlu0 %1028 }
 0x50c   : > { %v1033_v18 = vsub.f32 %v3414_v22, %v1029_v17 }
 0x50e   : > { %v1035_v20 = vmul.f32 1.442695, %v1033_v18 }
 0x50f   : > { %v1032_v21 = vpop.xlane.xlu0 %1031 }
 0x510   : > { %3013 = vpow2.f32 %v1035_v20  ;;  %v1034_v23 = vsub.f32 %v3418_v27, %v1032_v21 }
 0x512   : > { %v3480_v24 = vpop.eup %3009  ;;  %v1037_v32 = vmul.f32 1.442695, %v1034_v23 }
 0x513   : > { %v1188_v29 = vpop.xlane.xlu1 %1187  ;;  %v882_v16 = vsel %vm868_vm13, %v3480_v24, 0.0 }
 0x514   : > { %v3484_v30 = vpop.eup %3011  ;;  %3015 = vpow2.f32 %v1037_v32  ;;  %v1192_v19 = vsub.f32 %v3422_v31, %v1188_v29  ;;  %883 = vadd.xlane.f32.xlu1 %v882_v16 }
 0x515   : > { %v885_v22 = vsel %vm872_vm14, %v3484_v30, 0.0  ;;  %v1191_v41 = vpop.xlane.xlu0 %1190 }
 0x516   : > { %v1194_v33 = vmul.f32 1.442695, %v1192_v19  ;;  %886 = vadd.xlane.f32.xlu0 %v885_v22  ;;  %v1193_v44 = vsub.f32 %v3426_v35, %v1191_v41 }
 0x518   : > { %3017 = vpow2.f32 %v1194_v33  ;;  %v1196_v51 = vmul.f32 1.442695, %v1193_v44 }
 0x51a   : > { %v3489_v27 = vpop.eup %3013  ;;  %3019 = vpow2.f32 %v1196_v51 }
 0x51b   : > { %v1039_v34 = vsel %vm868_vm13, %v3489_v27, 0.0  ;;  %v1347_v45 = vpop.xlane.xlu1 %1346 }
 0x51c   : > { %1040 = vadd.xlane.f32.xlu1 %v1039_v34  ;;  %v1351_v54 = vsub.f32 %v3430_v39, %v1347_v45 }
 0x51d   : > { %v1350_v56 = vpop.xlane.xlu0 %1349 }
 0x51e   : > { %v3493_v36 = vpop.eup %3015  ;;  %v1353_v58 = vmul.f32 1.442695, %v1351_v54  ;;  %v1352_v60 = vsub.f32 %v3434_v43, %v1350_v56 }
 0x51f   : > { %v1042_v38 = vsel %vm872_vm14, %v3493_v36, 0.0  ;;  %v3506_v0 = vpop.permute.xlu1 %1223 }
 0x520   : > { %1043 = vadd.xlane.f32.xlu0 %v1042_v38  ;;  %3021 = vpow2.f32 %v1353_v58  ;;  %v1355_v62 = vmul.f32 1.442695, %v1352_v60 }
 0x521   : > { %v3508_v2 = vpop.permute.xlu0 %1064 }
 0x522   : > { %v3497_v31 = vpop.eup %3017  ;;  %3023 = vpow2.f32 %v1355_v62 }
 0x523   : > { %v1198_v40 = vsel %vm868_vm13, %v3497_v31, 0.0 }
 0x524   : > { %1199 = vadd.xlane.f32.xlu1 %v1198_v40  ;;  %v3510_v28 = vpop.eup %3019 }
 0x525   : > { %v1201_v43 = vsel %vm872_vm14, %v3510_v28, 0.0 }
 0x52a   : > { %v3516_v6 = vpop.eup %3021 }
 0x52c   : > { %v3522_v12 = vpop.eup %3023 }
 0x536   : > { %1546 = vrot.lane.b32.xlu0 %v3344_v37, %s3136_s25 }
 0x550   : > { %v1511_v37 = vpop.xlane.xlu1 %1510 }
 0x551   : > { %v1515_v35 = vsub.f32 %v3438_v50, %v1511_v37 }
 0x552   : > { %v1514_v3 = vpop.xlane.xlu0 %1513 }
 0x553   : > { %v1517_v26 = vmul.f32 1.442695, %v1515_v35  ;;  %v1516_v39 = vsub.f32 %v3440_v53, %v1514_v3  ;;  %v1357_v53 = vsel %vm868_vm13, %v3516_v6, 0.0 }
 0x554   : > { %v1667_v4 = vpop.xlane.xlu1 %1666 }
 0x555   : > { %3025 = vpow2.f32 %v1517_v26  ;;  %v1519_v7 = vmul.f32 1.442695, %v1516_v39  ;;  %v1671_v8 = vsub.f32 %v3442_v55, %v1667_v4  ;;  %1202 = vadd.xlane.f32.xlu0 %v1201_v43  ;;  %v1360_v55 = vsel %vm872_vm14, %v3522_v12, 0.0 }
 0x556   : > { %v1670_v9 = vpop.xlane.xlu0 %1669  ;;  %v1069_v4 = vand.u32 %v3508_v2, %v3378_v5 }
 0x557   : > { %3027 = vpow2.f32 %v1519_v7  ;;  %v1673_v10 = vmul.f32 1.442695, %v1671_v8  ;;  %v1672_v50 = vsub.f32 %v3444_v57, %v1670_v9  ;;  %v907_v7 = vld [vmem:[%s3267_s6 + $0x4] sm:$0x1] }
 0x558   : > { %v1831_v11 = vpop.xlane.xlu1 %1830 }
 0x559   : > { %3029 = vpow2.f32 %v1673_v10  ;;  %v1675_v13 = vmul.f32 1.442695, %v1672_v50  ;;  %v1835_v14 = vsub.f32 %v3448_v59, %v1831_v11  ;;  %1358 = vadd.xlane.f32.xlu0 %v1357_v53  ;;  %v1228_v53 = vand.u32 %v3506_v0, %v3378_v5 }
 0x55a   : > { %v1834_v38 = vpop.xlane.xlu0 %1833 }
 0x55b   : > { %3031 = vpow2.f32 %v1675_v13  ;;  %v1837_v17 = vmul.f32 1.442695, %v1835_v14  ;;  %v1836_v40 = vsub.f32 %v3452_v61, %v1834_v38  ;;  %v2668_v14 = vld [vmem:[%s3267_s6 + $0xc] sm:$0x1] }
 0x55c   : > { %v1995_v15 = vpop.xlane.xlu1 %1994 }
 0x55d   : > { %v1999_v18 = vsub.f32 %v3454_v63, %v1995_v15  ;;  %1361 = vadd.xlane.f32.xlu0 %v1360_v55  ;;  %3033 = vpow2.f32 %v1837_v17  ;;  %v1839_v44 = vmul.f32 1.442695, %v1836_v40 }
 0x55e   : > { %v1998_v41 = vpop.xlane.xlu0 %1997 }
 0x55f   : > { %v3528_v57 = vpop.eup %3025  ;;  %v2001_v23 = vmul.f32 1.442695, %v1999_v18  ;;  %v2000_v45 = vsub.f32 %v3456_v1, %v1998_v41 }
 0x560   : > { %v1521_v20 = vsel %vm868_vm13, %v3528_v57, 0.0  ;;  %v3566_v58 = vpop.permute.xlu1 %1382 }
 0x561   : > { %v3532_v21 = vpop.eup %3027  ;;  %1522 = vadd.xlane.f32.xlu1 %v1521_v20  ;;  %3035 = vpow2.f32 %v2001_v23  ;;  %v2003_v51 = vmul.f32 1.442695, %v2000_v45  ;;  %v1387_v40 = vand.u32 %v3566_v58, %v3378_v5 }
 0x562   : > { %v1524_v59 = vsel %vm872_vm14, %v3532_v21, 0.0  ;;  %3037 = vpow2.f32 %v1839_v44  ;;  %v2676_v44 = vld [vmem:[%s3267_s6 + $0x14] sm:$0x1] }
 0x563   : > { %v3536_v32 = vpop.eup %3029  ;;  %1525 = vadd.xlane.f32.xlu0 %v1524_v59  ;;  %3039 = vpow2.f32 %v2003_v51 }
 0x564   : > { %v1677_v63 = vsel %vm868_vm13, %v3536_v32, 0.0 }
 0x565   : > { %v3540_v29 = vpop.eup %3031 }
 0x566   : > { %v1680_v16 = vsel %vm872_vm14, %v3540_v29, 0.0 }
 0x567   : > { %1678 = vadd.xlane.f32.xlu0 %v1677_v63  ;;  %v3544_v19 = vpop.eup %3033 }
 0x568   : > { %v1841_v22 = vsel %vm868_vm13, %v3544_v19, 0.0 }
 0x56b   : > { %1681 = vadd.xlane.f32.xlu0 %v1680_v16  ;;  %v3548_v33 = vpop.eup %3035 }
 0x56c   : > { %v2005_v34 = vsel %vm868_vm13, %v3548_v33, 0.0  ;;  %v3558_v54 = vpop.eup %3037 }
 0x56d   : > { %v3562_v56 = vpop.eup %3039 }
 0x56e   : > { %v2008_v61 = vsel %vm872_vm14, %v3562_v56, 0.0 }
 0x56f   : > { %1842 = vadd.xlane.f32.xlu0 %v1841_v22 }
 0x572   : > { %1702 = vrot.lane.b32.xlu1 %v3349_v42, %s3147_s16  ;;  %v1844_v42 = vsel %vm872_vm14, %v3558_v54, 0.0 }
 0x573   : > { %2006 = vadd.xlane.f32.xlu0 %v2005_v34 }
 0x589   : > { %1866 = vrot.lane.b32.xlu0 %v3354_v47, %s3146_s21 }
 0x596   : > { %1845 = vadd.xlane.f32.xlu1 %v1844_v42 }
 0x59a   : > { %2009 = vadd.xlane.f32.xlu1 %v2008_v61 }
 0x5a1   : > { %v884_v1 = vpop.xlane.xlu1 %883 }
 0x5a2   : > { %3041 = vrcp.f32 %v884_v1 }
 0x5a3   : > { %v887_v60 = vpop.xlane.xlu0 %886 }
 0x5a4   : > { %3043 = vrcp.f32 %v887_v60 }
 0x5a9   : > { %v1041_v47 = vpop.xlane.xlu1 %1040 }
 0x5aa   : > { %3045 = vrcp.f32 %v1041_v47 }
 0x5ab   : > { %2030 = vrot.lane.b32.xlu1 %v3359_v52, %s3148_s29 }
 0x5ac   : > { %v3042_v62 = vpop.eup %3041 }
 0x5ad   : > { %v1044_v37 = vpop.xlane.xlu0 %1043  ;;  %v890_v3 = vmul.f32 %v3042_v62, %v3480_v24 }
 0x5ae   : > { %v3044_v35 = vpop.eup %3043  ;;  %3047 = vrcp.f32 %v1044_v37 }
 0x5af   : > { %v891_v26 = vmul.f32 %v3044_v35, %v3484_v30 }
 0x5b1   : > { %v892_v39 = vpack.c.bf16 %v891_v26, %v890_v3  ;;  %v1200_v0 = vpop.xlane.xlu1 %1199  ;;  %v2684_v3 = vld [vmem:[%s3267_s6 + $0x1c] sm:$0x1] }
 0x5b2   : > { %3049 = vrcp.f32 %v1200_v0 }
 0x5b3   : > { %v895_v43 = vsel %vm868_vm13, %v892_v39, 0  ;;  %2829 = vmatmul.mubr.msk.bf16.vlgmr.msra.gmra.mrb[0].mxu0 %vm868_vm13, %v892_v39 }
 0x5b4   : > { %v2660_v24 = vcombine.low %v895_v43, %v895_v43  ;;  %v2661_v30 = vcombine.high %v895_v43, %v895_v43  ;;  %2839 = vmatpush3.bf16.msra.mxu0 %v1069_v4  ;;  %2840 = vmatprep.mubr.msk.bf16.mxu0 %vm3138_vm9, %v3137_v25  ;;  %v3046_v2 = vpop.eup %3045 }
 0x5b5   : > { %2850 = vmatprep.subr.bf16.mxu0 %v3137_v25  ;;  %v1047_v10 = vmul.f32 %v3046_v2, %v3489_v27 }
 0x5b6   : > { %903 = vst [vmem:[%s3267_s6] sm:$0xf] %v2660_v24  ;;  %v908_v8 = vsel %vm3576_vm1, %v2661_v30, %v907_v7 }
 0x5b7   : > { %909 = vst [vmem:[%s3267_s6 + $0x4] sm:$0x1] %v908_v8 }
 0x5b8   : > { %v3048_v9 = vpop.eup %3047 }
 0x5b9   : > { %v1048_v50 = vmul.f32 %v3048_v9, %v3493_v36  ;;  %v1547_v36 = vpop.permute.xlu0 %1546  ;;  %v2692_v9 = vld [vmem:[%s3267_s6 + $0x24] sm:$0x1] }
 0x5ba   : > { %v1551_v37 = vand.u32 %v1547_v36, %v3378_v5  ;;  %v2700_v36 = vld [vmem:[%s3267_s6 + $0x2c] sm:$0x1] }
 0x5bb   : > { %v1049_v11 = vpack.c.bf16 %v1048_v50, %v1047_v10 }
 0x5bc   : > { %v3050_v23 = vpop.eup %3049 }
 0x5bd   : > { %v1051_v13 = vsel %vm868_vm13, %v1049_v11, 0  ;;  %2841 = vmatmul.mubr.msk.bf16.vlgmr.msra.gmra.mrb[4].mxu0 %vm868_vm13, %v1049_v11  ;;  %v1206_v63 = vmul.f32 %v3050_v23, %v3497_v31 }
 0x5be   : > { %v2665_v15 = vcombine.low %v1051_v13, %v1051_v13  ;;  %v2666_v55 = vcombine.high %v1051_v13, %v1051_v13  ;;  %2851 = vmatpush3.bf16.msra.mxu0 %v1228_v53  ;;  %2852 = vmatprep.mubr.msk.bf16.mxu0 %vm3138_vm9, %v3137_v25 }
 0x5bf   : > { %2862 = vmatprep.subr.bf16.mxu0 %v3137_v25 }
 0x5c0   : > { %2667 = vst [vmem:[%s3267_s6 + $0x8] sm:$0xf] %v2665_v15  ;;  %v1062_v27 = vsel %vm3576_vm1, %v2666_v55, %v2668_v14 }
 0x5c1   : > { %2669 = vst [vmem:[%s3267_s6 + $0xc] sm:$0x1] %v1062_v27 }
 0x5e2   : > { %v1203_v17 = vpop.xlane.xlu0 %1202 }
 0x5e3   : > { %3051 = vrcp.f32 %v1203_v17 }
 0x5e6   : > { %v1359_v18 = vpop.xlane.xlu0 %1358 }
 0x5e7   : > { %3053 = vrcp.f32 %v1359_v18 }
 0x5ea   : > { %v1362_v20 = vpop.xlane.xlu0 %1361 }
 0x5eb   : > { %3055 = vrcp.f32 %v1362_v20 }
 0x5ed   : > { %v3052_v59 = vpop.eup %3051 }
 0x5ee   : > { %v1207_v16 = vmul.f32 %v3052_v59, %v3510_v28  ;;  %v1523_v22 = vpop.xlane.xlu1 %1522 }
 0x5ef   : > { %3057 = vrcp.f32 %v1523_v22 }
 0x5f0   : > { %v1526_v34 = vpop.xlane.xlu0 %1525  ;;  %v1208_v38 = vpack.c.bf16 %v1207_v16, %v1206_v63 }
 0x5f1   : > { %3059 = vrcp.f32 %v1526_v34  ;;  %v3054_v45 = vpop.eup %3053 }
 0x5f2   : > { %v1210_v41 = vsel %vm868_vm13, %v1208_v38, 0  ;;  %2853 = vmatmul.mubr.msk.bf16.vlgmr.msra.gmra.mrb[8].mxu0 %vm868_vm13, %v1208_v38  ;;  %v1365_v58 = vmul.f32 %v3054_v45, %v3516_v6  ;;  %v1703_v24 = vpop.permute.xlu1 %1702 }
 0x5f3   : > { %v2673_v51 = vcombine.low %v1210_v41, %v1210_v41  ;;  %v2674_v31 = vcombine.high %v1210_v41, %v1210_v41  ;;  %2863 = vmatpush3.bf16.msra.mxu0 %v1387_v40  ;;  %2864 = vmatprep.mubr.msk.bf16.mxu0 %vm3138_vm9, %v3137_v25 }
 0x5f4   : > { %v1679_v28 = vpop.xlane.xlu0 %1678  ;;  %2874 = vmatprep.subr.bf16.mxu0 %v3137_v25 }
 0x5f5   : > { %v3056_v42 = vpop.eup %3055  ;;  %2675 = vst [vmem:[%s3267_s6 + $0x10] sm:$0xf] %v2673_v51  ;;  %v1221_v61 = vsel %vm3576_vm1, %v2674_v31, %v2676_v44  ;;  %3061 = vrcp.f32 %v1679_v28  ;;  %v2708_v31 = vld [vmem:[%s3267_s6 + $0x34] sm:$0x1] }
 0x5f6   : > { %v1366_v1 = vmul.f32 %v3056_v42, %v3522_v12  ;;  %2677 = vst [vmem:[%s3267_s6 + $0x14] sm:$0x1] %v1221_v61 }
 0x5f8   : > { %v1682_v60 = vpop.xlane.xlu0 %1681  ;;  %v1367_v47 = vpack.c.bf16 %v1366_v1, %v1365_v58  ;;  %v962_v1 = vld [vmem:[#allocation2] sm:$0xff] }
 0x5f9   : > { %v3058_v62 = vpop.eup %3057  ;;  %3063 = vrcp.f32 %v1682_v60  ;;  %v963_v60 = vld [vmem:[#allocation2 + $0x8] sm:$0x1] }
 0x5fa   : > { %v1369_v35 = vsel %vm868_vm13, %v1367_v47, 0  ;;  %2865 = vmatmul.mubr.msk.bf16.vlgmr.msra.gmra.mrb[12].mxu0 %vm868_vm13, %v1367_v47  ;;  %v1529_v12 = vmul.f32 %v3058_v62, %v3528_v57  ;;  %v1707_v57 = vand.u32 %v1703_v24, %v3378_v5 }
 0x5fb   : > { %v3060_v26 = vpop.eup %3059  ;;  %v2681_v6 = vcombine.low %v1369_v35, %v1369_v35  ;;  %v2682_v39 = vcombine.high %v1369_v35, %v1369_v35  ;;  %2875 = vmatpush3.bf16.msra.mxu0 %v1551_v37  ;;  %2876 = vmatprep.mubr.msk.bf16.mxu0 %vm3138_vm9, %v3137_v25 }
 0x5fc   : > { %v1530_v4 = vmul.f32 %v3060_v26, %v3532_v21  ;;  %v1843_v43 = vpop.xlane.xlu0 %1842  ;;  %2886 = vmatprep.subr.bf16.mxu0 %v3137_v25 }
 0x5fd   : > { %2683 = vst [vmem:[%s3267_s6 + $0x18] sm:$0xf] %v2681_v6  ;;  %v1380_v7 = vsel %vm3576_vm1, %v2682_v39, %v2684_v3  ;;  %3065 = vrcp.f32 %v1843_v43 }
 0x5fe   : > { %2685 = vst [vmem:[%s3267_s6 + $0x1c] sm:$0x1] %v1380_v7  ;;  %v1531_v30 = vpack.c.bf16 %v1530_v4, %v1529_v12 }
 0x5ff   : > { %v3062_v10 = vpop.eup %3061 }
 0x600   : > { %v2007_v2 = vpop.xlane.xlu0 %2006  ;;  %v1533_v8 = vsel %vm868_vm13, %v1531_v30, 0  ;;  %v1685_v13 = vmul.f32 %v3062_v10, %v3536_v32 }
 0x601   : > { %v2689_v21 = vcombine.low %v1533_v8, %v1533_v8  ;;  %v2690_v50 = vcombine.high %v1533_v8, %v1533_v8 }
 0x602   : > { %2877 = vmatmul.mubr.msk.bf16.vlgmr.msra.gmra.mrb[16].mxu0 %vm868_vm13, %v1531_v30 }
 0x603   : > { %v3064_v11 = vpop.eup %3063  ;;  %2691 = vst [vmem:[%s3267_s6 + $0x20] sm:$0xf] %v2689_v21  ;;  %v1544_v53 = vsel %vm3576_vm1, %v2690_v50, %v2692_v9  ;;  %2887 = vmatpush3.bf16.msra.mxu0 %v1707_v57  ;;  %2888 = vmatprep.mubr.msk.bf16.mxu0 %vm3138_vm9, %v3137_v25  ;;  %v1594_v9 = vld [vmem:[#allocation2 + $0x9] sm:$0xff]  ;;  %v1595_v57 = vld [vmem:[#allocation2 + $0x11] sm:$0x1] }
 0x604   : > { %v1686_v14 = vmul.f32 %v3064_v11, %v3540_v29  ;;  %2693 = vst [vmem:[%s3267_s6 + $0x24] sm:$0x1] %v1544_v53  ;;  %2898 = vmatprep.subr.bf16.mxu0 %v3137_v25  ;;  %v1867_v15 = vpop.permute.xlu0 %1866 }
 0x605   : > { %v1871_v0 = vand.u32 %v1867_v15, %v3378_v5 }
 0x606   : > { %v1687_v55 = vpack.c.bf16 %v1686_v14, %v1685_v13 }
 0x607   : > { %v3066_v23 = vpop.eup %3065 }
 0x608   : > { %v1689_v27 = vsel %vm868_vm13, %v1687_v55, 0  ;;  %v1849_v63 = vmul.f32 %v3066_v23, %v3544_v19 }
 0x609   : > { %v2697_v17 = vcombine.low %v1689_v27, %v1689_v27  ;;  %v2698_v18 = vcombine.high %v1689_v27, %v1689_v27 }
 0x60a   : > { %2889 = vmatmul.mubr.msk.bf16.vlgmr.msra.gmra.mrb[20].mxu0 %vm868_vm13, %v1687_v55 }
 0x60b   : > { %2699 = vst [vmem:[%s3267_s6 + $0x28] sm:$0xf] %v2697_v17  ;;  %v1700_v32 = vsel %vm3576_vm1, %v2698_v18, %v2700_v36  ;;  %2899 = vmatpush3.bf16.msra.mxu0 %v1871_v0  ;;  %2900 = vmatprep.mubr.msk.bf16.mxu0 %vm3138_vm9, %v3137_v25 }
 0x60c   : > { %2701 = vst [vmem:[%s3267_s6 + $0x2c] sm:$0x1] %v1700_v32  ;;  %2910 = vmatprep.subr.bf16.mxu0 %v3137_v25 }
 0x623   : > { %v1846_v29 = vpop.xlane.xlu1 %1845 }
 0x624   : > { %3067 = vrcp.f32 %v1846_v29 }
 0x625   : > { %3069 = vrcp.f32 %v2007_v2 }
 0x627   : > { %v2010_v20 = vpop.xlane.xlu1 %2009 }
 0x628   : > { %3071 = vrcp.f32 %v2010_v20 }
 0x62b   : > { %v2031_v22 = vpop.permute.xlu1 %2030 }
 0x62c   : > { %v2035_v41 = vand.u32 %v2031_v22, %v3378_v5 }
 0x62e   : > { %v3068_v59 = vpop.eup %3067 }
 0x62f   : > { %v1850_v16 = vmul.f32 %v3068_v59, %v3558_v54  ;;  %v3070_v34 = vpop.eup %3069 }
 0x630   : > { %v2013_v44 = vmul.f32 %v3070_v34, %v3548_v33 }
 0x631   : > { %v1851_v38 = vpack.c.bf16 %v1850_v16, %v1849_v63 }
 0x632   : > { %v3072_v40 = vpop.eup %3071 }
 0x633   : > { %v2014_v45 = vmul.f32 %v3072_v40, %v3562_v56  ;;  %v1853_v51 = vsel %vm868_vm13, %v1851_v38, 0  ;;  %2901 = vmatmul.mubr.msk.bf16.vlgmr.msra.gmra.mrb[24].mxu0 %vm868_vm13, %v1851_v38  ;;  %v2716_v56 = vld [vmem:[%s3267_s6 + $0x3c] sm:$0x1] }
 0x634   : > { %v2705_v19 = vcombine.low %v1853_v51, %v1853_v51  ;;  %v2706_v54 = vcombine.high %v1853_v51, %v1853_v51  ;;  %2911 = vmatpush3.bf16.msra.mxu0 %v2035_v41  ;;  %2912 = vmatprep.mubr.msk.bf16.mxu0 %vm3138_vm9, %v3137_v25  ;;  %vm1283_vm9 = vcmask 195712  }
 0x635   : > { %v2015_v28 = vpack.c.bf16 %v2014_v45, %v2013_v44 }
 0x636   : > { %2707 = vst [vmem:[%s3267_s6 + $0x30] sm:$0xf] %v2705_v19  ;;  %v1864_v5 = vsel %vm3576_vm1, %v2706_v54, %v2708_v31 }
 0x637   : > { %2709 = vst [vmem:[%s3267_s6 + $0x34] sm:$0x1] %v1864_v5  ;;  %v2017_v33 = vsel %vm868_vm13, %v2015_v28, 0 }
 0x638   : > { %v2713_v42 = vcombine.low %v2017_v33, %v2017_v33  ;;  %v2714_v61 = vcombine.high %v2017_v33, %v2017_v33 }
 0x63a   : > { %2715 = vst [vmem:[%s3267_s6 + $0x38] sm:$0xf] %v2713_v42  ;;  %v2028_v58 = vsel %vm3576_vm1, %v2714_v61, %v2716_v56 }
 0x63b   : > { %2717 = vst [vmem:[%s3267_s6 + $0x3c] sm:$0x1] %v2028_v58  ;;  %2913 = vmatmul.mubr.msk.bf16.vlgmr.msra.gmra.mrb[28].mxu0 %vm868_vm13, %v2015_v28  ;;  %s3150_s6 = smov 16  }
 0x686   : > { %v955_v25 = vpop.f32.mrb[0].mxu0 }
 0x687   : > { %v964_v47 = vadd.f32 %v962_v1, %v955_v25  ;;  %v2830_v62 = vpop.f32.mrb[1].mxu0 }
 0x688   : > { %v958_v37 = vpop.f32.mrb[2].mxu0 }
 0x689   : > { %966 = vst.msk [vmem:[#allocation2] sm:$0xff] %vm820_vm10, %v964_v47  ;;  %v965_v35 = vadd.f32 %v963_v60, %v958_v37  ;;  %v2831_v3 = vpop.f32.mrb[3].mxu0 }
 0x68b   : > { %968 = vst.msk [vmem:[#allocation2 + $0x8] sm:$0x1] %vm967_vm2, %v965_v35 }
 0x690   : > { %v1105_v26 = vpop.f32.mrb[4].mxu0  ;;  %v1112_v36 = vld [vmem:[#allocation2] sm:$0xff] }
 0x691   : > { %1116 = vrot.lane.b32.xlu1 %v1105_v26, %s3149_s12  ;;  %v2842_v52 = vpop.f32.mrb[5].mxu0 }
 0x692   : > { %v1108_v6 = vpop.f32.mrb[6].mxu0  ;;  %v1113_v29 = vld [vmem:[#allocation2 + $0x8] sm:$0x1] }
 0x693   : > { %v2843_v39 = vpop.f32.mrb[7].mxu0 }
 0x695   : > { %1118 = vrot.lane.b32.xlu1 %v1108_v6, %s3149_s12 }
 0x6c5   : > { %v1264_v12 = vpop.f32.mrb[8].mxu0 }
 0x6c6   : > { %v2854_v4 = vpop.f32.mrb[9].mxu0 }
 0x6c7   : > { %v1267_v43 = vpop.f32.mrb[10].mxu0 }
 0x6c8   : > { %1277 = vrot.lane.b32.xlu0 %v1267_v43, %s3150_s6  ;;  %v2855_v7 = vpop.f32.mrb[11].mxu0 }
 0x6cd   : > { %v1423_v24 = vpop.f32.mrb[12].mxu0 }
 0x6ce   : > { %v2866_v30 = vpop.f32.mrb[13].mxu0 }
 0x6cf   : > { %v1426_v2 = vpop.f32.mrb[14].mxu0 }
 0x6d0   : > { %v2867_v8 = vpop.f32.mrb[15].mxu0 }
 0x6d5   : > { %v1587_v10 = vpop.f32.mrb[16].mxu0 }
 0x6d6   : > { %v1596_v21 = vadd.f32 %v1594_v9, %v1587_v10  ;;  %v2878_v50 = vpop.f32.mrb[17].mxu0 }
 0x6d7   : > { %v1590_v11 = vpop.f32.mrb[18].mxu0 }
 0x6d8   : > { %1598 = vst.msk [vmem:[#allocation2 + $0x9] sm:$0xff] %vm820_vm10, %v1596_v21  ;;  %v1597_v53 = vadd.f32 %v1595_v57, %v1590_v11  ;;  %v2879_v13 = vpop.f32.mrb[19].mxu0  ;;  %vm1442_vm10 = vcmask 261312  }
 0x6da   : > { %1599 = vst.msk [vmem:[#allocation2 + $0x11] sm:$0x1] %vm967_vm2, %v1597_v53 }
 0x6dd   : > { %v1743_v14 = vpop.f32.mrb[20].mxu0 }
 0x6de   : > { %1754 = vrot.lane.b32.xlu1 %v1743_v14, %s3149_s12  ;;  %v2890_v15 = vpop.f32.mrb[21].mxu0 }
 0x6df   : > { %v1746_v55 = vpop.f32.mrb[22].mxu0  ;;  %v1750_v45 = vld [vmem:[#allocation2 + $0x9] sm:$0xff] }
 0x6e0   : > { %v2891_v27 = vpop.f32.mrb[23].mxu0 }
 0x6e1   : > { %v1751_v19 = vld [vmem:[#allocation2 + $0x11] sm:$0x1] }
 0x6e2   : > { %1756 = vrot.lane.b32.xlu1 %v1746_v55, %s3149_s12 }
 0x6e6   : > { %1275 = vrot.lane.b32.xlu1 %v1264_v12, %s3150_s6 }
 0x703   : > { %v1117_v0 = vpop.permute.xlu1 %1116 }
 0x704   : > { %v1122_v17 = vadd.f32 %v1117_v0, %v1112_v36 }
 0x706   : > { %1125 = vst.msk [vmem:[#allocation2] sm:$0xff] %vm1124_vm3, %v1122_v17  ;;  %v1907_v18 = vpop.f32.mrb[24].mxu0 }
 0x707   : > { %1918 = vrot.lane.b32.xlu1 %v1907_v18, %s3150_s6  ;;  %v2902_v32 = vpop.f32.mrb[25].mxu0  ;;  %v1119_v20 = vpop.permute.xlu1 %1118 }
 0x708   : > { %v1123_v23 = vadd.f32 %v1119_v20, %v1113_v29  ;;  %v1910_v59 = vpop.f32.mrb[26].mxu0  ;;  %v2719_v32 = vld [vmem:[%s3257_s26 + $0x1] ss:$0 sm:$0xff]  ;;  %v2998_v20 = vld [vmem:[%s3252_s23 + $0x8] sm:$0xff]  }
 0x709   : > { %1920 = vrot.lane.b32.xlu0 %v1910_v59, %s3150_s6  ;;  %v2903_v63 = vpop.f32.mrb[27].mxu0  ;;  %v2997_v29 = vld [vmem:[%s3252_s23] sm:$0xff]  }
 0x70a   : > { %1127 = vst.msk [vmem:[#allocation2 + $0x8] sm:$0x1] %vm1126_vm7, %v1123_v23  ;;  %2916 = vmatprep.subr.bf16.mxu1 %v2997_v29  ;;  %v631_v23 = vld [vmem:[%s3257_s26 + $0x1] sm:$0x3] }
 0x70b   : > { %1434 = vrot.lane.b32.xlu1 %v1423_v24, %s3151_s15  ;;  %2917 = vmatpush3.bf16.msra.mxu1 %v2997_v29  ;;  %v2157_v59 = vrot.slane %v631_v23, %v714_v48  ;;  %v2161_v63 = vrot.slane %v631_v23, %v718_v49 }
 0x70c   : > { %2918 = vmatprep.subr.bf16.mxu1 %v2998_v20 }
 0x70d   : > { %1436 = vrot.lane.b32.xlu0 %v1426_v2, %s3151_s15  ;;  %v1271_v5 = vld [vmem:[#allocation2] sm:$0xff] }
 0x70e   : > { %v2071_v16 = vpop.f32.mrb[28].mxu0 }
 0x70f   : > { %2082 = vrot.lane.b32.xlu1 %v2071_v16, %s3151_s15  ;;  %v2914_v22 = vpop.f32.mrb[29].mxu0  ;;  %2919 = vmatpush3.bf16.msra.mxu1 %v2998_v20 }
 0x710   : > { %v2074_v34 = vpop.f32.mrb[30].mxu0 }
 0x711   : > { %2084 = vrot.lane.b32.xlu0 %v2074_v34, %s3151_s15  ;;  %v2915_v38 = vpop.f32.mrb[31].mxu0  ;;  %v1272_v41 = vld [vmem:[#allocation2 + $0x8] sm:$0x1] }
 0x73a   : > { %v1278_v40 = vpop.permute.xlu0 %1277 }
 0x73b   : > { %v1282_v44 = vadd.f32 %v1278_v40, %v1272_v41 }
 0x73d   : > { %1286 = vst.msk [vmem:[#allocation2 + $0x8] sm:$0x1] %vm1285_vm8, %v1282_v44 }
 0x744   : > { %v1431_v3 = vld [vmem:[#allocation2 + $0x8] sm:$0x1] }
 0x750   : > { %v1755_v51 = vpop.permute.xlu1 %1754 }
 0x751   : > { %v1760_v31 = vadd.f32 %v1755_v51, %v1750_v45 }
 0x753   : > { %1762 = vst.msk [vmem:[#allocation2 + $0x9] sm:$0xff] %vm1124_vm3, %v1760_v31 }
 0x754   : > { %v1757_v54 = vpop.permute.xlu1 %1756 }
 0x755   : > { %v1761_v28 = vadd.f32 %v1757_v54, %v1751_v19 }
 0x757   : > { %1763 = vst.msk [vmem:[#allocation2 + $0x11] sm:$0x1] %vm1126_vm7, %v1761_v28 }
 0x758   : > { %v1276_v33 = vpop.permute.xlu1 %1275 }
 0x759   : > { %v1281_v56 = vadd.f32 %v1276_v33, %v1271_v5 }
 0x75a   : > { %v1914_v42 = vld [vmem:[#allocation2 + $0x9] sm:$0xff] }
 0x75b   : > { %1284 = vst.msk [vmem:[#allocation2] sm:$0xff] %vm1283_vm9, %v1281_v56 }
 0x75e   : > { %v1915_v25 = vld [vmem:[#allocation2 + $0x11] sm:$0x1] }
 0x762   : > { %v1430_v47 = vld [vmem:[#allocation2] sm:$0xff] }
 0x779   : > { %v1919_v61 = vpop.permute.xlu1 %1918 }
 0x77a   : > { %v1924_v58 = vadd.f32 %v1919_v61, %v1914_v42 }
 0x77b   : > { %v1921_v1 = vpop.permute.xlu0 %1920 }
 0x77c   : > { %1926 = vst.msk [vmem:[#allocation2 + $0x9] sm:$0xff] %vm1283_vm9, %v1924_v58  ;;  %v1925_v60 = vadd.f32 %v1921_v1, %v1915_v25 }
 0x77d   : > { %v1435_v62 = vpop.permute.xlu1 %1434 }
 0x77e   : > { %1927 = vst.msk [vmem:[#allocation2 + $0x11] sm:$0x1] %vm1285_vm8, %v1925_v60  ;;  %v1440_v37 = vadd.f32 %v1435_v62, %v1430_v47  ;;  %v2999_v47 = vld [vmem:[%s3262_s13] sm:$0xff]   ;;  %v3000_v62 = vld [vmem:[%s3262_s13 + $0x8] sm:$0xff]  }
 0x77f   : > { %v1437_v35 = vpop.permute.xlu0 %1436  ;;  %2924 = vmatprep.subr.bf16.mxu0 %v2999_v47 }
 0x780   : > { %1443 = vst.msk [vmem:[#allocation2] sm:$0xff] %vm1442_vm10, %v1440_v37  ;;  %v1441_v26 = vadd.f32 %v1437_v35, %v1431_v3  ;;  %2925 = vmatpush3.bf16.msra.mxu0 %v2999_v47  ;;  %v3001_v37 = vld [vmem:[%s3262_s13 + $0x10] sm:$0xff]   ;;  %v3002_v35 = vld [vmem:[%s3262_s13 + $0x18] sm:$0xff]   ;;  %v2724_v3 = vld [vmem:[%s3257_s26 + $0x2] ss:$0 sm:$0xff] }
 0x781   : > { %v2083_v6 = vpop.permute.xlu1 %2082  ;;  %2926 = vmatprep.subr.bf16.mxu0 %v3000_v62 }
 0x782   : > { %1445 = vst.msk [vmem:[#allocation2 + $0x8] sm:$0x1] %vm1444_vm11, %v1441_v26 }
 0x783   : > { %v2078_v52 = vld [vmem:[#allocation2 + $0x9] sm:$0xff]  ;;  %v2085_v12 = vpop.permute.xlu0 %2084 }
 0x784   : > { %v2088_v39 = vadd.f32 %v2083_v6, %v2078_v52  ;;  %2927 = vmatpush3.bf16.msra.mxu0 %v3000_v62 }
 0x785   : > { %v2079_v4 = vld [vmem:[#allocation2 + $0x11] sm:$0x1]  ;;  %2928 = vmatprep.subr.bf16.mxu0 %v3001_v37 }
 0x786   : > { %2090 = vst.msk [vmem:[#allocation2 + $0x9] sm:$0xff] %vm1442_vm10, %v2088_v39  ;;  %v2089_v43 = vadd.f32 %v2085_v12, %v2079_v4 }
 0x787   : > { %v3695_v7 = vld [vmem:[#allocation2] sm:$0xff] }
 0x788   : > { %2091 = vst.msk [vmem:[#allocation2 + $0x11] sm:$0x1] %vm1444_vm11, %v2089_v43  ;;  %v2095_v24 = vsel %vm652_vm4, %v3695_v7, 0.0  ;;  %2929 = vmatpush3.bf16.msra.mxu0 %v3001_v37 }
 0x789   : > { %2096 = vadd.xlane.f32.xlu1 %v2095_v24  ;;  %2930 = vmatprep.subr.bf16.mxu0 %v3002_v35 }
 0x78c   : > { %2931 = vmatpush3.bf16.msra.mxu0 %v3002_v35 }
 0x78d   : > { %v3699_v30 = vld [vmem:[#allocation2 + $0x8] sm:$0xff] }
 0x78e   : > { %v2098_v2 = vsel %vm652_vm4, %v3699_v30, 0.0 }
 0x78f   : > { %2099 = vadd.xlane.f32.xlu0 %v2098_v2  ;;  %v3703_v8 = vld [vmem:[#allocation2 + $0x10] sm:$0x3] }
 0x790   : > { %v2101_v9 = vsel %vm659_vm5, %v3703_v8, 0.0 }
 0x793   : > { %2102 = vadd.xlane.f32.xlu0 %v2101_v9 }
 0x816   : > { %v2097_v10 = vpop.xlane.xlu1 %2096 }
 0x817   : > { %v2104_v57 = vmul.f32 0.03125, %v2097_v10 }
 0x819   : > { %v2107_v21 = vsub.f32 %v3695_v7, %v2104_v57 }
 0x81b   : > { %v2110_v50 = vmul.f32 %v2107_v21, %v2107_v21 }
 0x81c   : > { %v2100_v11 = vpop.xlane.xlu0 %2099 }
 0x81d   : > { %v2105_v53 = vmul.f32 0.03125, %v2100_v11  ;;  %v2113_v13 = vsel %vm652_vm4, %v2110_v50, 0.0 }
 0x81e   : > { %2114 = vadd.xlane.f32.xlu0 %v2113_v13 }
 0x81f   : > { %v2108_v14 = vsub.f32 %v3699_v30, %v2105_v53 }
 0x820   : > { %v2103_v15 = vpop.xlane.xlu0 %2102 }
 0x821   : > { %v2106_v55 = vmul.f32 0.03125, %v2103_v15  ;;  %v2111_v27 = vmul.f32 %v2108_v14, %v2108_v14 }
 0x823   : > { %v2109_v36 = vsub.f32 %v3703_v8, %v2106_v55  ;;  %v2116_v0 = vsel %vm652_vm4, %v2111_v27, 0.0 }
 0x824   : > { %2117 = vadd.xlane.f32.xlu1 %v2116_v0 }
 0x825   : > { %v2112_v17 = vmul.f32 %v2109_v36, %v2109_v36 }
 0x827   : > { %v2119_v18 = vsel %vm659_vm5, %v2112_v17, 0.0 }
 0x828   : > { %2120 = vadd.xlane.f32.xlu0 %v2119_v18 }
 0x835   : > { %2139 = vrot.lane.b32.xlu1 %v2719_v32, %s3135_s24 }
 0x839   : > { %2174 = vrot.lane.b32.xlu1 %v2157_v59, %s3152_s22 }
 0x83d   : > { %2176 = vrot.lane.b32.xlu1 %v2161_v63, %s3152_s22 }
 0x83e   : > { %2145 = vrot.lane.b32.xlu0 %v2719_v32, %s3136_s25 }
 0x841   : > { %2343 = vrot.lane.b32.xlu1 %v2724_v3, %s3135_s24 }
 0x8ab   : > { %v2115_v16 = vpop.xlane.xlu0 %2114 }
 0x8ac   : > { %v2122_v22 = vmul.f32 0.03125, %v2115_v16 }
 0x8ae   : > { %v2125_v34 = vadd.f32 1e-05, %v2122_v22 }
 0x8b0   : > { %3073 = vrsqrt.f32 %v2125_v34 }
 0x8b1   : > { %v2118_v38 = vpop.xlane.xlu1 %2117 }
 0x8b2   : > { %v2123_v40 = vmul.f32 0.03125, %v2118_v38 }
 0x8b4   : > { %v2126_v41 = vadd.f32 1e-05, %v2123_v40 }
 0x8b5   : > { %v2121_v44 = vpop.xlane.xlu0 %2120  ;;  %v2140_v19 = vpop.permute.xlu1 %2139 }
 0x8b6   : > { %3075 = vrsqrt.f32 %v2126_v41  ;;  %v2124_v45 = vmul.f32 0.03125, %v2121_v44 }
 0x8b8   : > { %v2127_v51 = vadd.f32 1e-05, %v2124_v45 }
 0x8b9   : > { %v2146_v28 = vpop.permute.xlu0 %2145  ;;  %v2175_v26 = vpop.permute.xlu1 %2174 }
 0x8ba   : > { %v3074_v31 = vpop.eup %3073  ;;  %3077 = vrsqrt.f32 %v2127_v51 }
 0x8bb   : > { %v2131_v48 = vmul.f32 %v3074_v31, %v2107_v21 }
 0x8bd   : > { %v2142_v49 = vmul.f32 %v2140_v19, %v2131_v48  ;;  %v2177_v52 = vpop.permute.xlu1 %2176 }
 0x8be   : > { %v2178_v6 = vsel %vm652_vm4, %v2175_v26, %v2177_v52 }
 0x8bf   : > { %v2148_v42 = vadd.f32 %v2146_v28, %v2142_v49 }
 0x8c0   : > { %v3076_v54 = vpop.eup %3075 }
 0x8c1   : > { %v2132_v46 = vmul.f32 %v3076_v54, %v2108_v14 }
 0x8c3   : > { %v2143_v5 = vmul.f32 %v2140_v19, %v2132_v46 }
 0x8c4   : > { %v3078_v33 = vpop.eup %3077 }
 0x8c5   : > { %v2133_v56 = vmul.f32 %v3078_v33, %v2109_v36  ;;  %v2149_v61 = vadd.f32 %v2146_v28, %v2143_v5 }
 0x8c7   : > { %v2144_v58 = vmul.f32 %v2140_v19, %v2133_v56  ;;  %v2151_v1 = vpack.c.bf16 %v2149_v61, %v2148_v42 }
 0x8c9   : > { %v2150_v25 = vadd.f32 %v2146_v28, %v2144_v58  ;;  %2920 = vmatprep.mubr.msk.bf16.mxu1 %vm652_vm4, %v2151_v1 }
 0x8cb   : > { %v2152_v60 = vpack.c.bf16 %v2150_v25, %v2150_v25 }
 0x8cd   : > { %2921 = vmatmul.mubr.msk.bf16.vlgmr.msra.gmra.mrb[36].mxu1 %vm652_vm4, %v2152_v60 }
 0x9a0   : > { %v2922_v39 = vpop.f32.mrb[36].mxu1 }
 0x9a1   : > { %v3732_v12 = vadd.f32 %v2922_v39, %v2178_v6  ;;  %v2220_v4 = vpop.f32.mrb[37].mxu1 }
 0x9a2   : > { %v3734_v43 = vadd.f32 %v2220_v4, %v2178_v6  ;;  %v2923_v24 = vpop.f32.mrb[38].mxu1 }
 0x9a3   : > { %v3737_v2 = vmul.f32 0.70710677, %v3732_v12  ;;  %v2223_v9 = vpop.f32.mrb[39].mxu1 }
 0x9a4   : > { %v3740_v10 = vmul.f32 0.70710677, %v3734_v43  ;;  %v3742_v57 = vadd.f32 %v2223_v9, %v2178_v6  ;;  %v3153_v9 = vmov -1.0  }
 0x9a5   : > { %v2248_v21 = vand.u32 2147483647, %v3737_v2  ;;  %vm2242_vm12 = vcmp.ge.f32.partialorder %v3737_v2, 0.0 }
 0x9a6   : > { %v2246_v50 = vand.u32 2147483647, %v3740_v10  ;;  %v3747_v53 = vmul.f32 0.70710677, %v3742_v57  ;;  %vm2240_vm13 = vcmp.ge.f32.partialorder %v3740_v10, 0.0  ;;  %v2236_v10 = vmul.f32 0.5, %v3732_v12 }
 0x9a7   : > { %v2251_v11 = vmul.f32 0.3275911, %v2248_v21  ;;  %v2287_v0 = vsub.f32 0.0, %v2248_v21 }
 0x9a8   : > { %v2249_v13 = vmul.f32 0.3275911, %v2246_v50  ;;  %v2247_v15 = vand.u32 2147483647, %v3747_v53  ;;  %v2285_v17 = vsub.f32 0.0, %v2246_v50  ;;  %vm2241_vm14 = vcmp.ge.f32.partialorder %v3747_v53, 0.0  ;;  %v2344_v53 = vpop.permute.xlu1 %2343 }
 0x9a9   : > { %v2254_v14 = vadd.f32 1.0, %v2251_v11  ;;  %v2290_v32 = vmul.f32 %v2287_v0, %v2248_v21  ;;  %v2245_v21 = vsel %vm2242_vm12, 1.0, %v3153_v9  ;;  %v2244_v2 = vsel %vm2241_vm14, 1.0, %v3153_v9 }
 0x9aa   : > { %v2252_v55 = vadd.f32 1.0, %v2249_v13  ;;  %v2250_v27 = vmul.f32 0.3275911, %v2247_v15  ;;  %v2286_v29 = vsub.f32 0.0, %v2247_v15  ;;  %v2288_v59 = vmul.f32 %v2285_v17, %v2246_v50 }
 0x9ab   : > { %3079 = vrcp.f32 %v2254_v14  ;;  %v2295_v34 = vmul.f32 1.442695, %v2290_v32  ;;  %v2243_v13 = vsel %vm2240_vm13, 1.0, %v3153_v9  ;;  %v2234_v17 = vmul.f32 0.5, %v3734_v43 }
 0x9ac   : > { %3081 = vrcp.f32 %v2252_v55  ;;  %v2253_v36 = vadd.f32 1.0, %v2250_v27  ;;  %v2289_v40 = vmul.f32 %v2286_v29, %v2247_v15  ;;  %v2291_v44 = vmul.f32 1.442695, %v2288_v59 }
 0x9ae   : > { %3083 = vrcp.f32 %v2253_v36  ;;  %v2293_v54 = vmul.f32 1.442695, %v2289_v40 }
 0x9af   : > { %3085 = vpow2.f32 %v2295_v34 }
 0x9b0   : > { %3087 = vpow2.f32 %v2291_v44 }
 0x9b1   : > { %3089 = vpow2.f32 %v2293_v54 }
 0x9b5   : > { %v3080_v18 = vpop.eup %3079 }
 0x9b6   : > { %v3082_v20 = vpop.eup %3081  ;;  %v2260_v23 = vmul.f32 1.0614054, %v3080_v18 }
 0x9b7   : > { %v2258_v63 = vmul.f32 1.0614054, %v3082_v20 }
 0x9b8   : > { %v2263_v16 = vadd.f32 -1.4531521, %v2260_v23  ;;  %v3084_v22 = vpop.eup %3083 }
 0x9b9   : > { %v2261_v38 = vadd.f32 -1.4531521, %v2258_v63  ;;  %v2259_v45 = vmul.f32 1.0614054, %v3084_v22  ;;  %v3086_v37 = vpop.eup %3085 }
 0x9ba   : > { %v2266_v41 = vmul.f32 %v3080_v18, %v2263_v16  ;;  %v3088_v3 = vpop.eup %3087 }
 0x9bb   : > { %v2264_v51 = vmul.f32 %v3082_v20, %v2261_v38  ;;  %v2262_v48 = vadd.f32 -1.4531521, %v2259_v45  ;;  %v3090_v24 = vpop.eup %3089 }
 0x9bc   : > { %v2269_v31 = vadd.f32 1.4214138, %v2266_v41 }
 0x9bd   : > { %v2267_v19 = vadd.f32 1.4214138, %v2264_v51  ;;  %v2265_v49 = vmul.f32 %v3084_v22, %v2262_v48 }
 0x9be   : > { %v2272_v46 = vmul.f32 %v3080_v18, %v2269_v31 }
 0x9bf   : > { %v2270_v28 = vmul.f32 %v3082_v20, %v2267_v19  ;;  %v2268_v33 = vadd.f32 1.4214138, %v2265_v49 }
 0x9c0   : > { %v2275_v5 = vadd.f32 -0.28449672, %v2272_v46 }
 0x9c1   : > { %v2273_v56 = vadd.f32 -0.28449672, %v2270_v28  ;;  %v2271_v61 = vmul.f32 %v3084_v22, %v2268_v33  ;;  %v3154_v28 = vmov (!%p2731_p5), 0.0  }
 0x9c2   : > { %v2278_v42 = vmul.f32 %v3080_v18, %v2275_v5  ;;  %2936 = vmatprep.subr.bf16.mxu0 (!%p2731_p5), %v3154_v28  ;;  %v3092_v5 = vld [vmem:[%s3821_s11 + $0x8] sm:$0xff] (!%p2731_p5)  }
 0x9c3   : > { %v2276_v58 = vmul.f32 %v3082_v20, %v2273_v56  ;;  %v2274_v25 = vadd.f32 -0.28449672, %v2271_v61 }
 0x9c4   : > { %v2281_v1 = vadd.f32 0.2548296, %v2278_v42 }
 0x9c5   : > { %v2279_v60 = vadd.f32 0.2548296, %v2276_v58  ;;  %v2277_v62 = vmul.f32 %v3084_v22, %v2274_v25  ;;  %v2732_v58 = vld [vmem:[%s3819_s9] ss:$0 sm:$0xff] (!%p2731_p5) }
 0x9c6   : > { %v2284_v47 = vmul.f32 %v3080_v18, %v2281_v1  ;;  %v2235_v18 = vmul.f32 0.5, %v3742_v57  ;;  %v2733_v25 = vld [vmem:[%s3820_s10] ss:$0 sm:$0xff] (!%p2731_p5) }
 0x9c7   : > { %v2282_v35 = vmul.f32 %v3082_v20, %v2279_v60  ;;  %v2280_v52 = vadd.f32 0.2548296, %v2277_v62 }
 0x9c8   : > { %v2299_v26 = vmul.f32 %v3086_v37, %v2284_v47  ;;  %v2734_v37 = vld [vmem:[%s3834_s17] ss:$0 sm:$0xff] (!%p2731_p5) }
 0x9c9   : > { %v2297_v6 = vmul.f32 %v3088_v3, %v2282_v35  ;;  %v2283_v4 = vmul.f32 %v3084_v22, %v2280_v52 }
 0x9ca   : > { %v2302_v39 = vsub.f32 1.0, %v2299_v26 }
 0x9cb   : > { %v2300_v50 = vsub.f32 1.0, %v2297_v6  ;;  %v2298_v14 = vmul.f32 %v3090_v24, %v2283_v4 }
 0x9cc   : > { %v2305_v11 = vmul.f32 %v2302_v39, %v2245_v21 }
 0x9cd   : > { %v2303_v15 = vmul.f32 %v2300_v50, %v2243_v13  ;;  %v2301_v55 = vsub.f32 1.0, %v2298_v14 }
 0x9ce   : > { %v2308_v27 = vadd.f32 1.0, %v2305_v11 }
 0x9cf   : > { %v2306_v36 = vadd.f32 1.0, %v2303_v15  ;;  %v2304_v0 = vmul.f32 %v2301_v55, %v2244_v2 }
 0x9d0   : > { %v2311_v29 = vmul.f32 %v2308_v27, %v2236_v10 }
 0x9d1   : > { %v2307_v32 = vadd.f32 1.0, %v2304_v0  ;;  %v2309_v20 = vmul.f32 %v2306_v36, %v2234_v17 }
 0x9d2   : > { %v2313_v63 = vpack.c.bf16 %v2311_v29, %v2311_v29 }
 0x9d3   : > { %v2310_v23 = vmul.f32 %v2307_v32, %v2235_v18 }
 0x9d5   : > { %v2312_v59 = vpack.c.bf16 %v2310_v23, %v2309_v20 }
 0x9d7   : > { %2932 = vmatprep.mubr.msk.bf16.mxu0 %vm736_vm6, %v2312_v59 }
 0x9d8   : > { %2933 = vmatmul.mubr.msk.bf16.vlgmr.msra.gmra.mrb[32].mxu0 %vm736_vm6, %v2313_v63  ;;  %vm3155_vm6 = vmmov (!%p2731_p5), 0  }
 0x9d9   : > { %2940 = vmatprep.mubr.msk.bf16.mxu0 (!%p2731_p5), %vm3155_vm6, %v3154_v28 }
 0xaab   : > { %v2934_v16 = vpop.f32.mrb[32].mxu0 }
 0xaac   : > { %v2395_v22 = vadd.f32 %v2934_v16, %v2344_v53  ;;  %v2386_v34 = vpop.f32.mrb[33].mxu0 }
 0xaad   : > { %v2387_v38 = vadd.f32 %v2386_v34, %v2344_v53  ;;  %v2935_v12 = vpop.f32.mrb[34].mxu0  ;;  %2409 = sbr.rel (%p2731_p5) target bundleno = 3280 (0xcd0), region = 80 }
 0xaae   : > { %v2402_v43 = vadd.f32 %v2395_v22, %v3703_v8  ;;  %v2389_v40 = vpop.f32.mrb[35].mxu0 }
 0xaaf   : > { %v2400_v57 = vadd.f32 %v2387_v38, %v3695_v7  ;;  %v2390_v41 = vadd.f32 %v2389_v40, %v2344_v53 }
 0xab0   : > { %2405 = vst.msk [vmem:[#allocation2 + $0x10] sm:$0x3] %vm659_vm5, %v2402_v43 }
 0xab1   : > { %2403 = vst.msk [vmem:[#allocation2] sm:$0xff] %vm652_vm4, %v2400_v57  ;;  %v2401_v44 = vadd.f32 %v2390_v41, %v3699_v30  ;;  %v3091_v30 = vld [vmem:[%s3821_s11] sm:$0xff] (!%p2731_p5)  }
 0xab2   : > { %2937 = vmatpush3.bf16.msra.mxu0 (!%p2731_p5), %v3091_v30 }
 0xab3   : > { %2404 = vst.msk [vmem:[#allocation2 + $0x8] sm:$0xff] %vm652_vm4, %v2401_v44  ;;  %2938 = vmatprep.subr.bf16.mxu0 (!%p2731_p5), %v3154_v28 }
 0xab6   : > { %2939 = vmatpush3.bf16.msra.mxu0 %v3092_v5 }
 0xab8   : > { %v2410_v45 = vld [vmem:[#allocation2] sm:$0x1] }
 0xaba   : > { %v2411_v51 = vld [vmem:[#allocation2 + $0x9] sm:$0x1] }
 0xabb   : > { %v2413_v31 = vrot.slane %v2411_v51, 7 }
 0xabd   : > { %v2416_v8 = vsel %vm904_vm15, %v2410_v45, %v2413_v31 }
 0xabe   : > { %v2419_v48 = vsel %vm659_vm5, %v2416_v8, 0.0 }
 0xabf   : > { %2420 = vadd.xlane.f32.xlu0 %v2419_v48 }
 0xb4c   : > { %v2421_v7 = vpop.xlane.xlu0 %2420 }
 0xb4d   : > { %v2422_v19 = vmul.f32 0.03125, %v2421_v7 }
 0xb4f   : > { %v2423_v54 = vsub.f32 %v2416_v8, %v2422_v19 }
 0xb51   : > { %v2424_v46 = vmul.f32 %v2423_v54, %v2423_v54 }
 0xb53   : > { %v2425_v49 = vsel %vm659_vm5, %v2424_v46, 0.0  ;;  %vm2513_vm5 = vcmask 74752  }
 0xb54   : > { %2426 = vadd.xlane.f32.xlu0 %v2425_v49 }
 0xbe1   : > { %v2427_v33 = vpop.xlane.xlu0 %2426 }
 0xbe2   : > { %v2428_v56 = vmul.f32 0.03125, %v2427_v33 }
 0xbe4   : > { %v2429_v42 = vadd.f32 1e-05, %v2428_v56 }
 0xbe6   : > { %3093 = vrsqrt.f32 %v2429_v42 }
 0xbf0   : > { %v3094_v61 = vpop.eup %3093 }
 0xbf1   : > { %v2431_v1 = vmul.f32 %v3094_v61, %v2423_v54 }
 0xbf3   : > { %v2438_v60 = vmul.f32 %v2732_v58, %v2431_v1 }
 0xbf5   : > { %v2445_v47 = vadd.f32 %v2733_v25, %v2438_v60 }
 0xbf7   : > { %v2446_v62 = vpack.c.bf16 %v2445_v47, %v2445_v47 }
 0xbf9   : > { %2941 = vmatmul.mubr.msk.bf16.vlgmr.msra.gmra.mrb[0].mxu0 %vm652_vm4, %v2446_v62 }
 0xccc   : > { %v2507_v35 = vpop.f32.mrb[0].mxu0 }
 0xccd   : > { %v2508_v3 = vadd.f32 %v2734_v37, %v2507_v35  ;;  %v2942_v26 = vpop.f32.mrb[1].mxu0 }
 0xcce   : > { %v2510_v52 = vpop.f32.mrb[2].mxu0 }
 0xccf   : > { %2514 = vst.msk [vmem:[#allocation4] sm:$0x3] %vm2513_vm5, %v2508_v3  ;;  %v2943_v6 = vpop.f32.mrb[3].mxu0 }
 0xcd0 PF: > { %p2949_p6 = scmp.eq.s32.totalorder %s3238_s30, 1  ;;  %s3156_s21 = smov [#allocation4]  }
 0xcd1   : > { %s2527_s16 = sshll.u32 %s3156_s21, 4  ;;  %s2528_s16 = int_to_ptr.vmem [resolvable:$true] %s2527_s16 }
 0xcd2   : > { %s3095_s29 = scalar_lea.vmem %s2528_s16, 32  ;;  %p3102_p10 = scmp.lt.s32.totalorder %s2528_s16, %s2528_s16 }
 0xcd3   : > { %p3096_p7 = scmp.ne.s32.totalorder %s2528_s16, %s3095_s29  ;;  %p3103_p11 = scmp.lt.s32.totalorder %s3095_s29, %s3095_s29 }
 0xcd5   : > { %p3097_p8 = pnand %p3096_p7, %p2949_p6  ;;  %p3104_p12 = por %p3103_p11, %p3102_p10 }
 0xcd7   : > { %p3098_p9 = pneg %p3097_p8 }
 0xcd9   : > { %p3105_p13 = pnand %p3104_p12, %p3098_p9 }
 0xcdb   : > { %3108 = shalt.err (!%p3105_p13)
}
 0xcdc   : > { %s3835_s15 = sld [smem:[#allocation10_spill]] }
 0xce2   : > { %s3109_s22 = scalar_lea.hbm %s3835_s15, 32 }
 0xce3   : > { %p3110_p0 = scmp.ne.s32.totalorder %s3835_s15, %s3109_s22  ;;  %p3115_p3 = scmp.lt.u32.totalorder %s3109_s22, %s3835_s15 }
 0xce5   : > { %p3111_p1 = pnand %p3110_p0, %p2949_p6 }
 0xce7   : > { %p3112_p2 = pneg %p3111_p1 }
 0xce9   : > { %p3117_p4 = pnand %p3115_p3, %p3112_p2 }
 0xceb   : > { %3120 = shalt.err (!%p3117_p4)
}
 0xcec   : > { %2946 = dma.vmem_to_hbm [thread:$0]  (%p2949_p6), %s2528_s16, 32, %s3835_s15, [#allocation5]  }
 0xced   : > { %3126 = dma.done.wait (%p2949_p6), [#allocation5], 32  }
 0xcee   : > { %3128 = vsyncadd (%p2949_p6), [#allocation5], 4294967264 }
 0xcef PF: > { %s3836_s27 = sld [smem:[#allocation7_spill]] }
 0xcf5   : > { %s26_s29 = sadd.s32 1, %s3836_s27  }
 0xcf6   : > { %p23_p5 = scmp.ge.s32.totalorder %s26_s29, 4  }
 0xcf8   :  { %25 = sbr.rel (!%p23_p5) target bundleno = 5 (0x5), region = 135 }
 0xcff   :  { %2551 = vsyncpa [#allocation5], 1 }
 0xd00   :  { %2553 = vsyncpa [#allocation5 + $0x1], 1 }

</bundles_post_ra>
